<compile_context>
chip_gen: v7x
topology: tpu7x:2x2x1
jax: 0.10.0
libtpu: 0.0.40
codegen_flags: <defaults>
</compile_context>

<pallas_src>
import functools

import jax
import jax.numpy as jnp
from jax.experimental import pallas as pl
from jax.experimental.pallas import tpu as pltpu

# Network architecture (mirrors the nn.Sequential in StrategyAgent.__init__)
DIMS = [5, 64, 128, 256, 512, 256, 128, 64, 32, 4]   # 9 Linear layers
N_LIN = len(DIMS) - 1
HAS_RELU = [True] * 8 + [False]                       # ReLU after first 8 linears
HAS_LN   = [True] * 7 + [False, False]                # LayerNorm after first 7 linears
LN_EPS = 1e-5                                         # PyTorch nn.LayerNorm default
OUT_PAD = 128                                         # final layer zero-padded to 128 lanes


def _round_up(x, m):
    return ((x + m - 1) // m) * m


def mlp_kernel(*refs):
    """refs = (x_ref, *param_refs, out_ref). Params flattened in layer order."""
    x_ref = refs[0]
    out_ref = refs[-1]
    p = refs[1:-1]

    h = x_ref[...].astype(jnp.float32)
    idx = 0
    for i in range(N_LIN):
        w = p[idx][...]          # [in, out] bf16
        b = p[idx + 1][...]      # [1, out]  f32
        idx += 2
        # bf16 MXU matmul with f32 accumulation; bias / activations stay f32.
        h = jnp.dot(h.astype(jnp.bfloat16), w,
                    preferred_element_type=jnp.float32) + b
        if HAS_RELU[i]:
            h = jnp.maximum(h, 0.0)
        if HAS_LN[i]:
            gamma = p[idx][...]      # [1, out] f32
            beta = p[idx + 1][...]   # [1, out] f32
            idx += 2
            mean = jnp.mean(h, axis=-1, keepdims=True)
            var = jnp.mean((h - mean) ** 2, axis=-1, keepdims=True)  # biased, like PyTorch
            h = (h - mean) * jax.lax.rsqrt(var + LN_EPS) * gamma + beta
    out_ref[...] = h.astype(out_ref.dtype)


def init_params(key):
    """Deterministic init mimicking PyTorch Linear defaults (uniform +/- 1/sqrt(fan_in)).

    Weights are stored transposed ([in, out]) and in bf16; the last layer is zero-padded
    from 4 to OUT_PAD output columns so the kernel's output store is lane-dense.
    """
    params = []
    for i in range(N_LIN):
        d_in, d_out = DIMS[i], DIMS[i + 1]
        key, kw, kb = jax.random.split(key, 3)
        bound = 1.0 / jnp.sqrt(jnp.float32(d_in))
        w = jax.random.uniform(kw, (d_in, d_out), jnp.float32, -bound, bound)
        b = jax.random.uniform(kb, (1, d_out), jnp.float32, -bound, bound)
        if i == N_LIN - 1:  # pad final layer to OUT_PAD lanes with zeros (sliced off outside)
            w = jnp.pad(w, ((0, 0), (0, OUT_PAD - d_out)))
            b = jnp.pad(b, ((0, 0), (0, OUT_PAD - d_out)))
        params += [w.astype(jnp.bfloat16), b]
        if HAS_LN[i]:
            params += [jnp.ones((1, d_out), jnp.float32),
                       jnp.zeros((1, d_out), jnp.float32)]
    return params


@functools.lru_cache(maxsize=None)
def _build_forward(padded_batch, tm, param_shapes):
    grid = (padded_batch // tm,)

    in_specs = [pl.BlockSpec((tm, DIMS[0]), lambda i: (i, 0))]
    for shp in param_shapes:
        # Constant index_map: params stay resident in VMEM across all grid steps.
        in_specs.append(pl.BlockSpec(shp, lambda i: (0, 0)))
    out_spec = pl.BlockSpec((tm, OUT_PAD), lambda i: (i, 0))

    fwd = pl.pallas_call(
        mlp_kernel,
        out_shape=jax.ShapeDtypeStruct((padded_batch, OUT_PAD), jnp.float32),
        grid_spec=pltpu.PrefetchScalarGridSpec(
            num_scalar_prefetch=0,
            grid=grid,
            in_specs=in_specs,
            out_specs=out_spec,
        ),
        compiler_params=pltpu.CompilerParams(
            dimension_semantics=("parallel",),     # batch tiles are independent -> 2 TCs on v7x
            vmem_limit_bytes=16 << 20,             # kernel footprint is a few MiB; keep headroom
        ),
    )
    return jax.jit(fwd)


def strategy_agent_forward(x, params, tm=256):
    """Batched forward: pads the batch to a multiple of the tile, streams tiles through the
    resident weights, and slices the lane-padded output back to 4 logits per row."""
    batch = x.shape[0]
    tm_eff = min(tm, _round_up(batch, 8))          # small batches collapse to a single tile
    padded = _round_up(batch, tm_eff)
    if padded != batch:
        x = jnp.pad(x, ((0, padded - batch), (0, 0)))
    fwd = _build_forward(padded, tm_eff, tuple(p.shape for p in params))
    out = fwd(x, *params)
    return out[:batch, :DIMS[-1]]


def reference_forward(x, params):
    """Plain-JAX reference of the same forward pass (same bf16-matmul / f32-LN recipe)."""
    h = x.astype(jnp.float32)
    idx = 0
    for i in range(N_LIN):
        w, b = params[idx], params[idx + 1]
        idx += 2
        h = jnp.dot(h.astype(jnp.bfloat16), w, preferred_element_type=jnp.float32) + b
        if HAS_RELU[i]:
            h = jnp.maximum(h, 0.0)
        if HAS_LN[i]:
            gamma, beta = params[idx], params[idx + 1]
            idx += 2
            mean = jnp.mean(h, axis=-1, keepdims=True)
            var = jnp.mean((h - mean) ** 2, axis=-1, keepdims=True)
            h = (h - mean) * jax.lax.rsqrt(var + LN_EPS) * gamma + beta
    return h


if __name__ == "__main__":
    key = jax.random.PRNGKey(0)
    key, kx = jax.random.split(key)
    params = init_params(key)

    # Small-batch smoke test (tile clamps to the batch; grid = (1,)).
    x_small = jax.random.normal(kx, (8, DIMS[0]), jnp.float32)   # state vector has 5 features
    out_small = jax.block_until_ready(strategy_agent_forward(x_small, params))
    ref_small = reference_forward(x_small, params)[:, :DIMS[-1]]
    assert out_small.shape == (8, 4)
    assert jnp.allclose(out_small, ref_small, atol=1e-2, rtol=1e-2), \
        "Pallas output mismatch vs reference (small batch)"

    # Tiled-batch path: TM=256, batch=500 -> padded to 512, grid=(2,), weights stay resident.
    key, kx2 = jax.random.split(key)
    x_big = jax.random.normal(kx2, (500, DIMS[0]), jnp.float32)
    out_big = jax.block_until_ready(strategy_agent_forward(x_big, params, tm=256))
    ref_big = reference_forward(x_big, params)[:, :DIMS[-1]]
    assert out_big.shape == (500, 4)
    assert jnp.allclose(out_big, ref_big, atol=1e-2, rtol=1e-2), \
        "Pallas output mismatch vs reference (tiled batch)"

    print("KERNEL_OK")
</pallas_src>

<mosaic_0001>
module attributes {stable_mosaic.version = 11 : i64} {
  func.func @mlp_kernel(%arg0: i32, %arg1: memref<8x5xf32, #tpu.memory_space<vmem>>, %arg2: memref<5x64xbf16, #tpu.memory_space<vmem>>, %arg3: memref<1x64xf32, #tpu.memory_space<vmem>>, %arg4: memref<1x64xf32, #tpu.memory_space<vmem>>, %arg5: memref<1x64xf32, #tpu.memory_space<vmem>>, %arg6: memref<64x128xbf16, #tpu.memory_space<vmem>>, %arg7: memref<1x128xf32, #tpu.memory_space<vmem>>, %arg8: memref<1x128xf32, #tpu.memory_space<vmem>>, %arg9: memref<1x128xf32, #tpu.memory_space<vmem>>, %arg10: memref<128x256xbf16, #tpu.memory_space<vmem>>, %arg11: memref<1x256xf32, #tpu.memory_space<vmem>>, %arg12: memref<1x256xf32, #tpu.memory_space<vmem>>, %arg13: memref<1x256xf32, #tpu.memory_space<vmem>>, %arg14: memref<256x512xbf16, #tpu.memory_space<vmem>>, %arg15: memref<1x512xf32, #tpu.memory_space<vmem>>, %arg16: memref<1x512xf32, #tpu.memory_space<vmem>>, %arg17: memref<1x512xf32, #tpu.memory_space<vmem>>, %arg18: memref<512x256xbf16, #tpu.memory_space<vmem>>, %arg19: memref<1x256xf32, #tpu.memory_space<vmem>>, %arg20: memref<1x256xf32, #tpu.memory_space<vmem>>, %arg21: memref<1x256xf32, #tpu.memory_space<vmem>>, %arg22: memref<256x128xbf16, #tpu.memory_space<vmem>>, %arg23: memref<1x128xf32, #tpu.memory_space<vmem>>, %arg24: memref<1x128xf32, #tpu.memory_space<vmem>>, %arg25: memref<1x128xf32, #tpu.memory_space<vmem>>, %arg26: memref<128x64xbf16, #tpu.memory_space<vmem>>, %arg27: memref<1x64xf32, #tpu.memory_space<vmem>>, %arg28: memref<1x64xf32, #tpu.memory_space<vmem>>, %arg29: memref<1x64xf32, #tpu.memory_space<vmem>>, %arg30: memref<64x32xbf16, #tpu.memory_space<vmem>>, %arg31: memref<1x32xf32, #tpu.memory_space<vmem>>, %arg32: memref<32x128xbf16, #tpu.memory_space<vmem>>, %arg33: memref<1x128xf32, #tpu.memory_space<vmem>>, %arg34: memref<8x128xf32, #tpu.memory_space<vmem>>) attributes {dimension_semantics = [#tpu.dimension_semantics<parallel>], iteration_bounds = array<i64: 1>, scalar_prefetch = 0 : i64, scratch_operands = 0 : i64, tpu.core_type = #tpu.core_type<tc>, window_params = [{transform_indices = @transform_0, window_bounds = array<i64: 8, 5>}, {pipeline_mode = #tpu.pipeline_mode<synchronous>, transform_indices = @transform_1, window_bounds = array<i64: 5, 64>}, {pipeline_mode = #tpu.pipeline_mode<synchronous>, transform_indices = @transform_2, window_bounds = array<i64: 1, 64>}, {pipeline_mode = #tpu.pipeline_mode<synchronous>, transform_indices = @transform_3, window_bounds = array<i64: 1, 64>}, {pipeline_mode = #tpu.pipeline_mode<synchronous>, transform_indices = @transform_4, window_bounds = array<i64: 1, 64>}, {pipeline_mode = #tpu.pipeline_mode<synchronous>, transform_indices = @transform_5, window_bounds = array<i64: 64, 128>}, {pipeline_mode = #tpu.pipeline_mode<synchronous>, transform_indices = @transform_6, window_bounds = array<i64: 1, 128>}, {pipeline_mode = #tpu.pipeline_mode<synchronous>, transform_indices = @transform_7, window_bounds = array<i64: 1, 128>}, {pipeline_mode = #tpu.pipeline_mode<synchronous>, transform_indices = @transform_8, window_bounds = array<i64: 1, 128>}, {pipeline_mode = #tpu.pipeline_mode<synchronous>, transform_indices = @transform_9, window_bounds = array<i64: 128, 256>}, {pipeline_mode = #tpu.pipeline_mode<synchronous>, transform_indices = @transform_10, window_bounds = array<i64: 1, 256>}, {pipeline_mode = #tpu.pipeline_mode<synchronous>, transform_indices = @transform_11, window_bounds = array<i64: 1, 256>}, {pipeline_mode = #tpu.pipeline_mode<synchronous>, transform_indices = @transform_12, window_bounds = array<i64: 1, 256>}, {pipeline_mode = #tpu.pipeline_mode<synchronous>, transform_indices = @transform_13, window_bounds = array<i64: 256, 512>}, {pipeline_mode = #tpu.pipeline_mode<synchronous>, transform_indices = @transform_14, window_bounds = array<i64: 1, 512>}, {pipeline_mode = #tpu.pipeline_mode<synchronous>, transform_indices = @transform_15, window_bounds = array<i64: 1, 512>}, {pipeline_mode = #tpu.pipeline_mode<synchronous>, transform_indices = @transform_16, window_bounds = array<i64: 1, 512>}, {pipeline_mode = #tpu.pipeline_mode<synchronous>, transform_indices = @transform_17, window_bounds = array<i64: 512, 256>}, {pipeline_mode = #tpu.pipeline_mode<synchronous>, transform_indices = @transform_18, window_bounds = array<i64: 1, 256>}, {pipeline_mode = #tpu.pipeline_mode<synchronous>, transform_indices = @transform_19, window_bounds = array<i64: 1, 256>}, {pipeline_mode = #tpu.pipeline_mode<synchronous>, transform_indices = @transform_20, window_bounds = array<i64: 1, 256>}, {pipeline_mode = #tpu.pipeline_mode<synchronous>, transform_indices = @transform_21, window_bounds = array<i64: 256, 128>}, {pipeline_mode = #tpu.pipeline_mode<synchronous>, transform_indices = @transform_22, window_bounds = array<i64: 1, 128>}, {pipeline_mode = #tpu.pipeline_mode<synchronous>, transform_indices = @transform_23, window_bounds = array<i64: 1, 128>}, {pipeline_mode = #tpu.pipeline_mode<synchronous>, transform_indices = @transform_24, window_bounds = array<i64: 1, 128>}, {pipeline_mode = #tpu.pipeline_mode<synchronous>, transform_indices = @transform_25, window_bounds = array<i64: 128, 64>}, {pipeline_mode = #tpu.pipeline_mode<synchronous>, transform_indices = @transform_26, window_bounds = array<i64: 1, 64>}, {pipeline_mode = #tpu.pipeline_mode<synchronous>, transform_indices = @transform_27, window_bounds = array<i64: 1, 64>}, {pipeline_mode = #tpu.pipeline_mode<synchronous>, transform_indices = @transform_28, window_bounds = array<i64: 1, 64>}, {pipeline_mode = #tpu.pipeline_mode<synchronous>, transform_indices = @transform_29, window_bounds = array<i64: 64, 32>}, {pipeline_mode = #tpu.pipeline_mode<synchronous>, transform_indices = @transform_30, window_bounds = array<i64: 1, 32>}, {pipeline_mode = #tpu.pipeline_mode<synchronous>, transform_indices = @transform_31, window_bounds = array<i64: 32, 128>}, {pipeline_mode = #tpu.pipeline_mode<synchronous>, transform_indices = @transform_32, window_bounds = array<i64: 1, 128>}, {transform_indices = @transform_33, window_bounds = array<i64: 8, 128>}]} {
    %c0 = arith.constant 0 : index
    %c0_0 = arith.constant 0 : index
    %0 = vector.load %arg1[%c0, %c0_0] : memref<8x5xf32, #tpu.memory_space<vmem>>, vector<8x5xf32>
    %c0_1 = arith.constant 0 : index
    %c0_2 = arith.constant 0 : index
    %1 = vector.load %arg2[%c0_1, %c0_2] : memref<5x64xbf16, #tpu.memory_space<vmem>>, vector<5x64xbf16>
    %c0_3 = arith.constant 0 : index
    %c0_4 = arith.constant 0 : index
    %2 = vector.load %arg3[%c0_3, %c0_4] : memref<1x64xf32, #tpu.memory_space<vmem>>, vector<1x64xf32>
    %3 = arith.truncf %0 : vector<8x5xf32> to vector<8x5xbf16>
    %cst = arith.constant dense<0.000000e+00> : vector<8x64xf32>
    %4 = tpu.matmul %3, %1, %cst {dimension_numbers = #tpu.dot_dimension_numbers<[1], [0], [0], [1], [0, 0, 1, 1], [], []>} : vector<8x5xbf16>, vector<5x64xbf16>, vector<8x64xf32> -> vector<8x64xf32>
    %5 = vector.broadcast %2 : vector<1x64xf32> to vector<8x64xf32>
    %6 = arith.addf %4, %5 : vector<8x64xf32>
    %cst_5 = arith.constant 0.000000e+00 : f32
    %7 = vector.broadcast %cst_5 : f32 to vector<8x64xf32>
    %8 = arith.maximumf %6, %7 : vector<8x64xf32>
    %c0_6 = arith.constant 0 : index
    %c0_7 = arith.constant 0 : index
    %9 = vector.load %arg4[%c0_6, %c0_7] : memref<1x64xf32, #tpu.memory_space<vmem>>, vector<1x64xf32>
    %c0_8 = arith.constant 0 : index
    %c0_9 = arith.constant 0 : index
    %10 = vector.load %arg5[%c0_8, %c0_9] : memref<1x64xf32, #tpu.memory_space<vmem>>, vector<1x64xf32>
    %cst_10 = arith.constant dense<0.000000e+00> : vector<8xf32>
    %11 = vector.multi_reduction <add>, %8, %cst_10 [1] : vector<8x64xf32> to vector<8xf32>
    %12 = vector.shape_cast %11 : vector<8xf32> to vector<8x1xf32>
    %cst_11 = arith.constant 6.400000e+01 : f32
    %13 = vector.broadcast %cst_11 : f32 to vector<8x1xf32>
    %14 = arith.divf %12, %13 : vector<8x1xf32>
    %15 = vector.broadcast %14 : vector<8x1xf32> to vector<8x64xf32>
    %16 = arith.subf %8, %15 : vector<8x64xf32>
    %17 = arith.mulf %16, %16 : vector<8x64xf32>
    %cst_12 = arith.constant dense<0.000000e+00> : vector<8xf32>
    %18 = vector.multi_reduction <add>, %17, %cst_12 [1] : vector<8x64xf32> to vector<8xf32>
    %19 = vector.shape_cast %18 : vector<8xf32> to vector<8x1xf32>
    %cst_13 = arith.constant 6.400000e+01 : f32
    %20 = vector.broadcast %cst_13 : f32 to vector<8x1xf32>
    %21 = arith.divf %19, %20 : vector<8x1xf32>
    %22 = vector.broadcast %14 : vector<8x1xf32> to vector<8x64xf32>
    %23 = arith.subf %8, %22 : vector<8x64xf32>
    %cst_14 = arith.constant 9.99999974E-6 : f32
    %24 = vector.broadcast %cst_14 : f32 to vector<8x1xf32>
    %25 = arith.addf %21, %24 : vector<8x1xf32>
    %26 = math.rsqrt %25 : vector<8x1xf32>
    %27 = vector.broadcast %26 : vector<8x1xf32> to vector<8x64xf32>
    %28 = arith.mulf %23, %27 : vector<8x64xf32>
    %29 = vector.broadcast %9 : vector<1x64xf32> to vector<8x64xf32>
    %30 = arith.mulf %28, %29 : vector<8x64xf32>
    %31 = vector.broadcast %10 : vector<1x64xf32> to vector<8x64xf32>
    %32 = arith.addf %30, %31 : vector<8x64xf32>
    %c0_15 = arith.constant 0 : index
    %c0_16 = arith.constant 0 : index
    %33 = vector.load %arg6[%c0_15, %c0_16] : memref<64x128xbf16, #tpu.memory_space<vmem>>, vector<64x128xbf16>
    %c0_17 = arith.constant 0 : index
    %c0_18 = arith.constant 0 : index
    %34 = vector.load %arg7[%c0_17, %c0_18] : memref<1x128xf32, #tpu.memory_space<vmem>>, vector<1x128xf32>
    %35 = arith.truncf %32 : vector<8x64xf32> to vector<8x64xbf16>
    %cst_19 = arith.constant dense<0.000000e+00> : vector<8x128xf32>
    %36 = tpu.matmul %35, %33, %cst_19 {dimension_numbers = #tpu.dot_dimension_numbers<[1], [0], [0], [1], [0, 0, 1, 1], [], []>} : vector<8x64xbf16>, vector<64x128xbf16>, vector<8x128xf32> -> vector<8x128xf32>
    %37 = vector.broadcast %34 : vector<1x128xf32> to vector<8x128xf32>
    %38 = arith.addf %36, %37 : vector<8x128xf32>
    %cst_20 = arith.constant 0.000000e+00 : f32
    %39 = vector.broadcast %cst_20 : f32 to vector<8x128xf32>
    %40 = arith.maximumf %38, %39 : vector<8x128xf32>
    %c0_21 = arith.constant 0 : index
    %c0_22 = arith.constant 0 : index
    %41 = vector.load %arg8[%c0_21, %c0_22] : memref<1x128xf32, #tpu.memory_space<vmem>>, vector<1x128xf32>
    %c0_23 = arith.constant 0 : index
    %c0_24 = arith.constant 0 : index
    %42 = vector.load %arg9[%c0_23, %c0_24] : memref<1x128xf32, #tpu.memory_space<vmem>>, vector<1x128xf32>
    %cst_25 = arith.constant dense<0.000000e+00> : vector<8xf32>
    %43 = vector.multi_reduction <add>, %40, %cst_25 [1] : vector<8x128xf32> to vector<8xf32>
    %44 = vector.shape_cast %43 : vector<8xf32> to vector<8x1xf32>
    %cst_26 = arith.constant 1.280000e+02 : f32
    %45 = vector.broadcast %cst_26 : f32 to vector<8x1xf32>
    %46 = arith.divf %44, %45 : vector<8x1xf32>
    %47 = vector.broadcast %46 : vector<8x1xf32> to vector<8x128xf32>
    %48 = arith.subf %40, %47 : vector<8x128xf32>
    %49 = arith.mulf %48, %48 : vector<8x128xf32>
    %cst_27 = arith.constant dense<0.000000e+00> : vector<8xf32>
    %50 = vector.multi_reduction <add>, %49, %cst_27 [1] : vector<8x128xf32> to vector<8xf32>
    %51 = vector.shape_cast %50 : vector<8xf32> to vector<8x1xf32>
    %cst_28 = arith.constant 1.280000e+02 : f32
    %52 = vector.broadcast %cst_28 : f32 to vector<8x1xf32>
    %53 = arith.divf %51, %52 : vector<8x1xf32>
    %54 = vector.broadcast %46 : vector<8x1xf32> to vector<8x128xf32>
    %55 = arith.subf %40, %54 : vector<8x128xf32>
    %cst_29 = arith.constant 9.99999974E-6 : f32
    %56 = vector.broadcast %cst_29 : f32 to vector<8x1xf32>
    %57 = arith.addf %53, %56 : vector<8x1xf32>
    %58 = math.rsqrt %57 : vector<8x1xf32>
    %59 = vector.broadcast %58 : vector<8x1xf32> to vector<8x128xf32>
    %60 = arith.mulf %55, %59 : vector<8x128xf32>
    %61 = vector.broadcast %41 : vector<1x128xf32> to vector<8x128xf32>
    %62 = arith.mulf %60, %61 : vector<8x128xf32>
    %63 = vector.broadcast %42 : vector<1x128xf32> to vector<8x128xf32>
    %64 = arith.addf %62, %63 : vector<8x128xf32>
    %c0_30 = arith.constant 0 : index
    %c0_31 = arith.constant 0 : index
    %65 = vector.load %arg10[%c0_30, %c0_31] : memref<128x256xbf16, #tpu.memory_space<vmem>>, vector<128x256xbf16>
    %c0_32 = arith.constant 0 : index
    %c0_33 = arith.constant 0 : index
    %66 = vector.load %arg11[%c0_32, %c0_33] : memref<1x256xf32, #tpu.memory_space<vmem>>, vector<1x256xf32>
    %67 = arith.truncf %64 : vector<8x128xf32> to vector<8x128xbf16>
    %cst_34 = arith.constant dense<0.000000e+00> : vector<8x256xf32>
    %68 = tpu.matmul %67, %65, %cst_34 {dimension_numbers = #tpu.dot_dimension_numbers<[1], [0], [0], [1], [0, 0, 1, 1], [], []>} : vector<8x128xbf16>, vector<128x256xbf16>, vector<8x256xf32> -> vector<8x256xf32>
    %69 = vector.broadcast %66 : vector<1x256xf32> to vector<8x256xf32>
    %70 = arith.addf %68, %69 : vector<8x256xf32>
    %cst_35 = arith.constant 0.000000e+00 : f32
    %71 = vector.broadcast %cst_35 : f32 to vector<8x256xf32>
    %72 = arith.maximumf %70, %71 : vector<8x256xf32>
    %c0_36 = arith.constant 0 : index
    %c0_37 = arith.constant 0 : index
    %73 = vector.load %arg12[%c0_36, %c0_37] : memref<1x256xf32, #tpu.memory_space<vmem>>, vector<1x256xf32>
    %c0_38 = arith.constant 0 : index
    %c0_39 = arith.constant 0 : index
    %74 = vector.load %arg13[%c0_38, %c0_39] : memref<1x256xf32, #tpu.memory_space<vmem>>, vector<1x256xf32>
    %cst_40 = arith.constant dense<0.000000e+00> : vector<8xf32>
    %75 = vector.multi_reduction <add>, %72, %cst_40 [1] : vector<8x256xf32> to vector<8xf32>
    %76 = vector.shape_cast %75 : vector<8xf32> to vector<8x1xf32>
    %cst_41 = arith.constant 2.560000e+02 : f32
    %77 = vector.broadcast %cst_41 : f32 to vector<8x1xf32>
    %78 = arith.divf %76, %77 : vector<8x1xf32>
    %79 = vector.broadcast %78 : vector<8x1xf32> to vector<8x256xf32>
    %80 = arith.subf %72, %79 : vector<8x256xf32>
    %81 = arith.mulf %80, %80 : vector<8x256xf32>
    %cst_42 = arith.constant dense<0.000000e+00> : vector<8xf32>
    %82 = vector.multi_reduction <add>, %81, %cst_42 [1] : vector<8x256xf32> to vector<8xf32>
    %83 = vector.shape_cast %82 : vector<8xf32> to vector<8x1xf32>
    %cst_43 = arith.constant 2.560000e+02 : f32
    %84 = vector.broadcast %cst_43 : f32 to vector<8x1xf32>
    %85 = arith.divf %83, %84 : vector<8x1xf32>
    %86 = vector.broadcast %78 : vector<8x1xf32> to vector<8x256xf32>
    %87 = arith.subf %72, %86 : vector<8x256xf32>
    %cst_44 = arith.constant 9.99999974E-6 : f32
    %88 = vector.broadcast %cst_44 : f32 to vector<8x1xf32>
    %89 = arith.addf %85, %88 : vector<8x1xf32>
    %90 = math.rsqrt %89 : vector<8x1xf32>
    %91 = vector.broadcast %90 : vector<8x1xf32> to vector<8x256xf32>
    %92 = arith.mulf %87, %91 : vector<8x256xf32>
    %93 = vector.broadcast %73 : vector<1x256xf32> to vector<8x256xf32>
    %94 = arith.mulf %92, %93 : vector<8x256xf32>
    %95 = vector.broadcast %74 : vector<1x256xf32> to vector<8x256xf32>
    %96 = arith.addf %94, %95 : vector<8x256xf32>
    %c0_45 = arith.constant 0 : index
    %c0_46 = arith.constant 0 : index
    %97 = vector.load %arg14[%c0_45, %c0_46] : memref<256x512xbf16, #tpu.memory_space<vmem>>, vector<256x512xbf16>
    %c0_47 = arith.constant 0 : index
    %c0_48 = arith.constant 0 : index
    %98 = vector.load %arg15[%c0_47, %c0_48] : memref<1x512xf32, #tpu.memory_space<vmem>>, vector<1x512xf32>
    %99 = arith.truncf %96 : vector<8x256xf32> to vector<8x256xbf16>
    %cst_49 = arith.constant dense<0.000000e+00> : vector<8x512xf32>
    %100 = tpu.matmul %99, %97, %cst_49 {dimension_numbers = #tpu.dot_dimension_numbers<[1], [0], [0], [1], [0, 0, 1, 1], [], []>} : vector<8x256xbf16>, vector<256x512xbf16>, vector<8x512xf32> -> vector<8x512xf32>
    %101 = vector.broadcast %98 : vector<1x512xf32> to vector<8x512xf32>
    %102 = arith.addf %100, %101 : vector<8x512xf32>
    %cst_50 = arith.constant 0.000000e+00 : f32
    %103 = vector.broadcast %cst_50 : f32 to vector<8x512xf32>
    %104 = arith.maximumf %102, %103 : vector<8x512xf32>
    %c0_51 = arith.constant 0 : index
    %c0_52 = arith.constant 0 : index
    %105 = vector.load %arg16[%c0_51, %c0_52] : memref<1x512xf32, #tpu.memory_space<vmem>>, vector<1x512xf32>
    %c0_53 = arith.constant 0 : index
    %c0_54 = arith.constant 0 : index
    %106 = vector.load %arg17[%c0_53, %c0_54] : memref<1x512xf32, #tpu.memory_space<vmem>>, vector<1x512xf32>
    %cst_55 = arith.constant dense<0.000000e+00> : vector<8xf32>
    %107 = vector.multi_reduction <add>, %104, %cst_55 [1] : vector<8x512xf32> to vector<8xf32>
    %108 = vector.shape_cast %107 : vector<8xf32> to vector<8x1xf32>
    %cst_56 = arith.constant 5.120000e+02 : f32
    %109 = vector.broadcast %cst_56 : f32 to vector<8x1xf32>
    %110 = arith.divf %108, %109 : vector<8x1xf32>
    %111 = vector.broadcast %110 : vector<8x1xf32> to vector<8x512xf32>
    %112 = arith.subf %104, %111 : vector<8x512xf32>
    %113 = arith.mulf %112, %112 : vector<8x512xf32>
    %cst_57 = arith.constant dense<0.000000e+00> : vector<8xf32>
    %114 = vector.multi_reduction <add>, %113, %cst_57 [1] : vector<8x512xf32> to vector<8xf32>
    %115 = vector.shape_cast %114 : vector<8xf32> to vector<8x1xf32>
    %cst_58 = arith.constant 5.120000e+02 : f32
    %116 = vector.broadcast %cst_58 : f32 to vector<8x1xf32>
    %117 = arith.divf %115, %116 : vector<8x1xf32>
    %118 = vector.broadcast %110 : vector<8x1xf32> to vector<8x512xf32>
    %119 = arith.subf %104, %118 : vector<8x512xf32>
    %cst_59 = arith.constant 9.99999974E-6 : f32
    %120 = vector.broadcast %cst_59 : f32 to vector<8x1xf32>
    %121 = arith.addf %117, %120 : vector<8x1xf32>
    %122 = math.rsqrt %121 : vector<8x1xf32>
    %123 = vector.broadcast %122 : vector<8x1xf32> to vector<8x512xf32>
    %124 = arith.mulf %119, %123 : vector<8x512xf32>
    %125 = vector.broadcast %105 : vector<1x512xf32> to vector<8x512xf32>
    %126 = arith.mulf %124, %125 : vector<8x512xf32>
    %127 = vector.broadcast %106 : vector<1x512xf32> to vector<8x512xf32>
    %128 = arith.addf %126, %127 : vector<8x512xf32>
    %c0_60 = arith.constant 0 : index
    %c0_61 = arith.constant 0 : index
    %129 = vector.load %arg18[%c0_60, %c0_61] : memref<512x256xbf16, #tpu.memory_space<vmem>>, vector<512x256xbf16>
    %c0_62 = arith.constant 0 : index
    %c0_63 = arith.constant 0 : index
    %130 = vector.load %arg19[%c0_62, %c0_63] : memref<1x256xf32, #tpu.memory_space<vmem>>, vector<1x256xf32>
    %131 = arith.truncf %128 : vector<8x512xf32> to vector<8x512xbf16>
    %cst_64 = arith.constant dense<0.000000e+00> : vector<8x256xf32>
    %132 = tpu.matmul %131, %129, %cst_64 {dimension_numbers = #tpu.dot_dimension_numbers<[1], [0], [0], [1], [0, 0, 1, 1], [], []>} : vector<8x512xbf16>, vector<512x256xbf16>, vector<8x256xf32> -> vector<8x256xf32>
    %133 = vector.broadcast %130 : vector<1x256xf32> to vector<8x256xf32>
    %134 = arith.addf %132, %133 : vector<8x256xf32>
    %cst_65 = arith.constant 0.000000e+00 : f32
    %135 = vector.broadcast %cst_65 : f32 to vector<8x256xf32>
    %136 = arith.maximumf %134, %135 : vector<8x256xf32>
    %c0_66 = arith.constant 0 : index
    %c0_67 = arith.constant 0 : index
    %137 = vector.load %arg20[%c0_66, %c0_67] : memref<1x256xf32, #tpu.memory_space<vmem>>, vector<1x256xf32>
    %c0_68 = arith.constant 0 : index
    %c0_69 = arith.constant 0 : index
    %138 = vector.load %arg21[%c0_68, %c0_69] : memref<1x256xf32, #tpu.memory_space<vmem>>, vector<1x256xf32>
    %cst_70 = arith.constant dense<0.000000e+00> : vector<8xf32>
    %139 = vector.multi_reduction <add>, %136, %cst_70 [1] : vector<8x256xf32> to vector<8xf32>
    %140 = vector.shape_cast %139 : vector<8xf32> to vector<8x1xf32>
    %cst_71 = arith.constant 2.560000e+02 : f32
    %141 = vector.broadcast %cst_71 : f32 to vector<8x1xf32>
    %142 = arith.divf %140, %141 : vector<8x1xf32>
    %143 = vector.broadcast %142 : vector<8x1xf32> to vector<8x256xf32>
    %144 = arith.subf %136, %143 : vector<8x256xf32>
    %145 = arith.mulf %144, %144 : vector<8x256xf32>
    %cst_72 = arith.constant dense<0.000000e+00> : vector<8xf32>
    %146 = vector.multi_reduction <add>, %145, %cst_72 [1] : vector<8x256xf32> to vector<8xf32>
    %147 = vector.shape_cast %146 : vector<8xf32> to vector<8x1xf32>
    %cst_73 = arith.constant 2.560000e+02 : f32
    %148 = vector.broadcast %cst_73 : f32 to vector<8x1xf32>
    %149 = arith.divf %147, %148 : vector<8x1xf32>
    %150 = vector.broadcast %142 : vector<8x1xf32> to vector<8x256xf32>
    %151 = arith.subf %136, %150 : vector<8x256xf32>
    %cst_74 = arith.constant 9.99999974E-6 : f32
    %152 = vector.broadcast %cst_74 : f32 to vector<8x1xf32>
    %153 = arith.addf %149, %152 : vector<8x1xf32>
    %154 = math.rsqrt %153 : vector<8x1xf32>
    %155 = vector.broadcast %154 : vector<8x1xf32> to vector<8x256xf32>
    %156 = arith.mulf %151, %155 : vector<8x256xf32>
    %157 = vector.broadcast %137 : vector<1x256xf32> to vector<8x256xf32>
    %158 = arith.mulf %156, %157 : vector<8x256xf32>
    %159 = vector.broadcast %138 : vector<1x256xf32> to vector<8x256xf32>
    %160 = arith.addf %158, %159 : vector<8x256xf32>
    %c0_75 = arith.constant 0 : index
    %c0_76 = arith.constant 0 : index
    %161 = vector.load %arg22[%c0_75, %c0_76] : memref<256x128xbf16, #tpu.memory_space<vmem>>, vector<256x128xbf16>
    %c0_77 = arith.constant 0 : index
    %c0_78 = arith.constant 0 : index
    %162 = vector.load %arg23[%c0_77, %c0_78] : memref<1x128xf32, #tpu.memory_space<vmem>>, vector<1x128xf32>
    %163 = arith.truncf %160 : vector<8x256xf32> to vector<8x256xbf16>
    %cst_79 = arith.constant dense<0.000000e+00> : vector<8x128xf32>
    %164 = tpu.matmul %163, %161, %cst_79 {dimension_numbers = #tpu.dot_dimension_numbers<[1], [0], [0], [1], [0, 0, 1, 1], [], []>} : vector<8x256xbf16>, vector<256x128xbf16>, vector<8x128xf32> -> vector<8x128xf32>
    %165 = vector.broadcast %162 : vector<1x128xf32> to vector<8x128xf32>
    %166 = arith.addf %164, %165 : vector<8x128xf32>
    %cst_80 = arith.constant 0.000000e+00 : f32
    %167 = vector.broadcast %cst_80 : f32 to vector<8x128xf32>
    %168 = arith.maximumf %166, %167 : vector<8x128xf32>
    %c0_81 = arith.constant 0 : index
    %c0_82 = arith.constant 0 : index
    %169 = vector.load %arg24[%c0_81, %c0_82] : memref<1x128xf32, #tpu.memory_space<vmem>>, vector<1x128xf32>
    %c0_83 = arith.constant 0 : index
    %c0_84 = arith.constant 0 : index
    %170 = vector.load %arg25[%c0_83, %c0_84] : memref<1x128xf32, #tpu.memory_space<vmem>>, vector<1x128xf32>
    %cst_85 = arith.constant dense<0.000000e+00> : vector<8xf32>
    %171 = vector.multi_reduction <add>, %168, %cst_85 [1] : vector<8x128xf32> to vector<8xf32>
    %172 = vector.shape_cast %171 : vector<8xf32> to vector<8x1xf32>
    %cst_86 = arith.constant 1.280000e+02 : f32
    %173 = vector.broadcast %cst_86 : f32 to vector<8x1xf32>
    %174 = arith.divf %172, %173 : vector<8x1xf32>
    %175 = vector.broadcast %174 : vector<8x1xf32> to vector<8x128xf32>
    %176 = arith.subf %168, %175 : vector<8x128xf32>
    %177 = arith.mulf %176, %176 : vector<8x128xf32>
    %cst_87 = arith.constant dense<0.000000e+00> : vector<8xf32>
    %178 = vector.multi_reduction <add>, %177, %cst_87 [1] : vector<8x128xf32> to vector<8xf32>
    %179 = vector.shape_cast %178 : vector<8xf32> to vector<8x1xf32>
    %cst_88 = arith.constant 1.280000e+02 : f32
    %180 = vector.broadcast %cst_88 : f32 to vector<8x1xf32>
    %181 = arith.divf %179, %180 : vector<8x1xf32>
    %182 = vector.broadcast %174 : vector<8x1xf32> to vector<8x128xf32>
    %183 = arith.subf %168, %182 : vector<8x128xf32>
    %cst_89 = arith.constant 9.99999974E-6 : f32
    %184 = vector.broadcast %cst_89 : f32 to vector<8x1xf32>
    %185 = arith.addf %181, %184 : vector<8x1xf32>
    %186 = math.rsqrt %185 : vector<8x1xf32>
    %187 = vector.broadcast %186 : vector<8x1xf32> to vector<8x128xf32>
    %188 = arith.mulf %183, %187 : vector<8x128xf32>
    %189 = vector.broadcast %169 : vector<1x128xf32> to vector<8x128xf32>
    %190 = arith.mulf %188, %189 : vector<8x128xf32>
    %191 = vector.broadcast %170 : vector<1x128xf32> to vector<8x128xf32>
    %192 = arith.addf %190, %191 : vector<8x128xf32>
    %c0_90 = arith.constant 0 : index
    %c0_91 = arith.constant 0 : index
    %193 = vector.load %arg26[%c0_90, %c0_91] : memref<128x64xbf16, #tpu.memory_space<vmem>>, vector<128x64xbf16>
    %c0_92 = arith.constant 0 : index
    %c0_93 = arith.constant 0 : index
    %194 = vector.load %arg27[%c0_92, %c0_93] : memref<1x64xf32, #tpu.memory_space<vmem>>, vector<1x64xf32>
    %195 = arith.truncf %192 : vector<8x128xf32> to vector<8x128xbf16>
    %cst_94 = arith.constant dense<0.000000e+00> : vector<8x64xf32>
    %196 = tpu.matmul %195, %193, %cst_94 {dimension_numbers = #tpu.dot_dimension_numbers<[1], [0], [0], [1], [0, 0, 1, 1], [], []>} : vector<8x128xbf16>, vector<128x64xbf16>, vector<8x64xf32> -> vector<8x64xf32>
    %197 = vector.broadcast %194 : vector<1x64xf32> to vector<8x64xf32>
    %198 = arith.addf %196, %197 : vector<8x64xf32>
    %cst_95 = arith.constant 0.000000e+00 : f32
    %199 = vector.broadcast %cst_95 : f32 to vector<8x64xf32>
    %200 = arith.maximumf %198, %199 : vector<8x64xf32>
    %c0_96 = arith.constant 0 : index
    %c0_97 = arith.constant 0 : index
    %201 = vector.load %arg28[%c0_96, %c0_97] : memref<1x64xf32, #tpu.memory_space<vmem>>, vector<1x64xf32>
    %c0_98 = arith.constant 0 : index
    %c0_99 = arith.constant 0 : index
    %202 = vector.load %arg29[%c0_98, %c0_99] : memref<1x64xf32, #tpu.memory_space<vmem>>, vector<1x64xf32>
    %cst_100 = arith.constant dense<0.000000e+00> : vector<8xf32>
    %203 = vector.multi_reduction <add>, %200, %cst_100 [1] : vector<8x64xf32> to vector<8xf32>
    %204 = vector.shape_cast %203 : vector<8xf32> to vector<8x1xf32>
    %cst_101 = arith.constant 6.400000e+01 : f32
    %205 = vector.broadcast %cst_101 : f32 to vector<8x1xf32>
    %206 = arith.divf %204, %205 : vector<8x1xf32>
    %207 = vector.broadcast %206 : vector<8x1xf32> to vector<8x64xf32>
    %208 = arith.subf %200, %207 : vector<8x64xf32>
    %209 = arith.mulf %208, %208 : vector<8x64xf32>
    %cst_102 = arith.constant dense<0.000000e+00> : vector<8xf32>
    %210 = vector.multi_reduction <add>, %209, %cst_102 [1] : vector<8x64xf32> to vector<8xf32>
    %211 = vector.shape_cast %210 : vector<8xf32> to vector<8x1xf32>
    %cst_103 = arith.constant 6.400000e+01 : f32
    %212 = vector.broadcast %cst_103 : f32 to vector<8x1xf32>
    %213 = arith.divf %211, %212 : vector<8x1xf32>
    %214 = vector.broadcast %206 : vector<8x1xf32> to vector<8x64xf32>
    %215 = arith.subf %200, %214 : vector<8x64xf32>
    %cst_104 = arith.constant 9.99999974E-6 : f32
    %216 = vector.broadcast %cst_104 : f32 to vector<8x1xf32>
    %217 = arith.addf %213, %216 : vector<8x1xf32>
    %218 = math.rsqrt %217 : vector<8x1xf32>
    %219 = vector.broadcast %218 : vector<8x1xf32> to vector<8x64xf32>
    %220 = arith.mulf %215, %219 : vector<8x64xf32>
    %221 = vector.broadcast %201 : vector<1x64xf32> to vector<8x64xf32>
    %222 = arith.mulf %220, %221 : vector<8x64xf32>
    %223 = vector.broadcast %202 : vector<1x64xf32> to vector<8x64xf32>
    %224 = arith.addf %222, %223 : vector<8x64xf32>
    %c0_105 = arith.constant 0 : index
    %c0_106 = arith.constant 0 : index
    %225 = vector.load %arg30[%c0_105, %c0_106] : memref<64x32xbf16, #tpu.memory_space<vmem>>, vector<64x32xbf16>
    %c0_107 = arith.constant 0 : index
    %c0_108 = arith.constant 0 : index
    %226 = vector.load %arg31[%c0_107, %c0_108] : memref<1x32xf32, #tpu.memory_space<vmem>>, vector<1x32xf32>
    %227 = arith.truncf %224 : vector<8x64xf32> to vector<8x64xbf16>
    %cst_109 = arith.constant dense<0.000000e+00> : vector<8x32xf32>
    %228 = tpu.matmul %227, %225, %cst_109 {dimension_numbers = #tpu.dot_dimension_numbers<[1], [0], [0], [1], [0, 0, 1, 1], [], []>} : vector<8x64xbf16>, vector<64x32xbf16>, vector<8x32xf32> -> vector<8x32xf32>
    %229 = vector.broadcast %226 : vector<1x32xf32> to vector<8x32xf32>
    %230 = arith.addf %228, %229 : vector<8x32xf32>
    %cst_110 = arith.constant 0.000000e+00 : f32
    %231 = vector.broadcast %cst_110 : f32 to vector<8x32xf32>
    %232 = arith.maximumf %230, %231 : vector<8x32xf32>
    %c0_111 = arith.constant 0 : index
    %c0_112 = arith.constant 0 : index
    %233 = vector.load %arg32[%c0_111, %c0_112] : memref<32x128xbf16, #tpu.memory_space<vmem>>, vector<32x128xbf16>
    %c0_113 = arith.constant 0 : index
    %c0_114 = arith.constant 0 : index
    %234 = vector.load %arg33[%c0_113, %c0_114] : memref<1x128xf32, #tpu.memory_space<vmem>>, vector<1x128xf32>
    %235 = arith.truncf %232 : vector<8x32xf32> to vector<8x32xbf16>
    %cst_115 = arith.constant dense<0.000000e+00> : vector<8x128xf32>
    %236 = tpu.matmul %235, %233, %cst_115 {dimension_numbers = #tpu.dot_dimension_numbers<[1], [0], [0], [1], [0, 0, 1, 1], [], []>} : vector<8x32xbf16>, vector<32x128xbf16>, vector<8x128xf32> -> vector<8x128xf32>
    %237 = vector.broadcast %234 : vector<1x128xf32> to vector<8x128xf32>
    %238 = arith.addf %236, %237 : vector<8x128xf32>
    %c0_116 = arith.constant 0 : index
    %c0_117 = arith.constant 0 : index
    %239 = vector.load %arg34[%c0_116, %c0_117] : memref<8x128xf32, #tpu.memory_space<vmem>>, vector<8x128xf32>
    tpu.vector_store %arg34[%c0_116, %c0_117], %238 {strides = array<i32>} : memref<8x128xf32, #tpu.memory_space<vmem>>, vector<8x128xf32>,
    return
  }
  func.func @transform_0(%arg0: i32) -> (i32, i32) {
    %c0_i32 = arith.constant 0 : i32
    %c0_i32_0 = arith.constant 0 : i32
    return %arg0, %c0_i32 : i32, i32
  }
  func.func @transform_1(%arg0: i32) -> (i32, i32) {
    %c0_i32 = arith.constant 0 : i32
    %c0_i32_0 = arith.constant 0 : i32
    %c0_i32_1 = arith.constant 0 : i32
    return %c0_i32, %c0_i32_0 : i32, i32
  }
  func.func @transform_2(%arg0: i32) -> (i32, i32) {
    %c0_i32 = arith.constant 0 : i32
    %c0_i32_0 = arith.constant 0 : i32
    %c0_i32_1 = arith.constant 0 : i32
    return %c0_i32, %c0_i32_0 : i32, i32
  }
  func.func @transform_3(%arg0: i32) -> (i32, i32) {
    %c0_i32 = arith.constant 0 : i32
    %c0_i32_0 = arith.constant 0 : i32
    %c0_i32_1 = arith.constant 0 : i32
    return %c0_i32, %c0_i32_0 : i32, i32
  }
  func.func @transform_4(%arg0: i32) -> (i32, i32) {
    %c0_i32 = arith.constant 0 : i32
    %c0_i32_0 = arith.constant 0 : i32
    %c0_i32_1 = arith.constant 0 : i32
    return %c0_i32, %c0_i32_0 : i32, i32
  }
  func.func @transform_5(%arg0: i32) -> (i32, i32) {
    %c0_i32 = arith.constant 0 : i32
    %c0_i32_0 = arith.constant 0 : i32
    %c0_i32_1 = arith.constant 0 : i32
    return %c0_i32, %c0_i32_0 : i32, i32
  }
  func.func @transform_6(%arg0: i32) -> (i32, i32) {
    %c0_i32 = arith.constant 0 : i32
    %c0_i32_0 = arith.constant 0 : i32
    %c0_i32_1 = arith.constant 0 : i32
    return %c0_i32, %c0_i32_0 : i32, i32
  }
  func.func @transform_7(%arg0: i32) -> (i32, i32) {
    %c0_i32 = arith.constant 0 : i32
    %c0_i32_0 = arith.constant 0 : i32
    %c0_i32_1 = arith.constant 0 : i32
    return %c0_i32, %c0_i32_0 : i32, i32
  }
  func.func @transform_8(%arg0: i32) -> (i32, i32) {
    %c0_i32 = arith.constant 0 : i32
    %c0_i32_0 = arith.constant 0 : i32
    %c0_i32_1 = arith.constant 0 : i32
    return %c0_i32, %c0_i32_0 : i32, i32
  }
  func.func @transform_9(%arg0: i32) -> (i32, i32) {
    %c0_i32 = arith.constant 0 : i32
    %c0_i32_0 = arith.constant 0 : i32
    %c0_i32_1 = arith.constant 0 : i32
    return %c0_i32, %c0_i32_0 : i32, i32
  }
  func.func @transform_10(%arg0: i32) -> (i32, i32) {
    %c0_i32 = arith.constant 0 : i32
    %c0_i32_0 = arith.constant 0 : i32
    %c0_i32_1 = arith.constant 0 : i32
    return %c0_i32, %c0_i32_0 : i32, i32
  }
  func.func @transform_11(%arg0: i32) -> (i32, i32) {
    %c0_i32 = arith.constant 0 : i32
    %c0_i32_0 = arith.constant 0 : i32
    %c0_i32_1 = arith.constant 0 : i32
    return %c0_i32, %c0_i32_0 : i32, i32
  }
  func.func @transform_12(%arg0: i32) -> (i32, i32) {
    %c0_i32 = arith.constant 0 : i32
    %c0_i32_0 = arith.constant 0 : i32
    %c0_i32_1 = arith.constant 0 : i32
    return %c0_i32, %c0_i32_0 : i32, i32
  }
  func.func @transform_13(%arg0: i32) -> (i32, i32) {
    %c0_i32 = arith.constant 0 : i32
    %c0_i32_0 = arith.constant 0 : i32
    %c0_i32_1 = arith.constant 0 : i32
    return %c0_i32, %c0_i32_0 : i32, i32
  }
  func.func @transform_14(%arg0: i32) -> (i32, i32) {
    %c0_i32 = arith.constant 0 : i32
    %c0_i32_0 = arith.constant 0 : i32
    %c0_i32_1 = arith.constant 0 : i32
    return %c0_i32, %c0_i32_0 : i32, i32
  }
  func.func @transform_15(%arg0: i32) -> (i32, i32) {
    %c0_i32 = arith.constant 0 : i32
    %c0_i32_0 = arith.constant 0 : i32
    %c0_i32_1 = arith.constant 0 : i32
    return %c0_i32, %c0_i32_0 : i32, i32
  }
  func.func @transform_16(%arg0: i32) -> (i32, i32) {
    %c0_i32 = arith.constant 0 : i32
    %c0_i32_0 = arith.constant 0 : i32
    %c0_i32_1 = arith.constant 0 : i32
    return %c0_i32, %c0_i32_0 : i32, i32
  }
  func.func @transform_17(%arg0: i32) -> (i32, i32) {
    %c0_i32 = arith.constant 0 : i32
    %c0_i32_0 = arith.constant 0 : i32
    %c0_i32_1 = arith.constant 0 : i32
    return %c0_i32, %c0_i32_0 : i32, i32
  }
  func.func @transform_18(%arg0: i32) -> (i32, i32) {
    %c0_i32 = arith.constant 0 : i32
    %c0_i32_0 = arith.constant 0 : i32
    %c0_i32_1 = arith.constant 0 : i32
    return %c0_i32, %c0_i32_0 : i32, i32
  }
  func.func @transform_19(%arg0: i32) -> (i32, i32) {
    %c0_i32 = arith.constant 0 : i32
    %c0_i32_0 = arith.constant 0 : i32
    %c0_i32_1 = arith.constant 0 : i32
    return %c0_i32, %c0_i32_0 : i32, i32
  }
  func.func @transform_20(%arg0: i32) -> (i32, i32) {
    %c0_i32 = arith.constant 0 : i32
    %c0_i32_0 = arith.constant 0 : i32
    %c0_i32_1 = arith.constant 0 : i32
    return %c0_i32, %c0_i32_0 : i32, i32
  }
  func.func @transform_21(%arg0: i32) -> (i32, i32) {
    %c0_i32 = arith.constant 0 : i32
    %c0_i32_0 = arith.constant 0 : i32
    %c0_i32_1 = arith.constant 0 : i32
    return %c0_i32, %c0_i32_0 : i32, i32
  }
  func.func @transform_22(%arg0: i32) -> (i32, i32) {
    %c0_i32 = arith.constant 0 : i32
    %c0_i32_0 = arith.constant 0 : i32
    %c0_i32_1 = arith.constant 0 : i32
    return %c0_i32, %c0_i32_0 : i32, i32
  }
  func.func @transform_23(%arg0: i32) -> (i32, i32) {
    %c0_i32 = arith.constant 0 : i32
    %c0_i32_0 = arith.constant 0 : i32
    %c0_i32_1 = arith.constant 0 : i32
    return %c0_i32, %c0_i32_0 : i32, i32
  }
  func.func @transform_24(%arg0: i32) -> (i32, i32) {
    %c0_i32 = arith.constant 0 : i32
    %c0_i32_0 = arith.constant 0 : i32
    %c0_i32_1 = arith.constant 0 : i32
    return %c0_i32, %c0_i32_0 : i32, i32
  }
  func.func @transform_25(%arg0: i32) -> (i32, i32) {
    %c0_i32 = arith.constant 0 : i32
    %c0_i32_0 = arith.constant 0 : i32
    %c0_i32_1 = arith.constant 0 : i32
    return %c0_i32, %c0_i32_0 : i32, i32
  }
  func.func @transform_26(%arg0: i32) -> (i32, i32) {
    %c0_i32 = arith.constant 0 : i32
    %c0_i32_0 = arith.constant 0 : i32
    %c0_i32_1 = arith.constant 0 : i32
    return %c0_i32, %c0_i32_0 : i32, i32
  }
  func.func @transform_27(%arg0: i32) -> (i32, i32) {
    %c0_i32 = arith.constant 0 : i32
    %c0_i32_0 = arith.constant 0 : i32
    %c0_i32_1 = arith.constant 0 : i32
    return %c0_i32, %c0_i32_0 : i32, i32
  }
  func.func @transform_28(%arg0: i32) -> (i32, i32) {
    %c0_i32 = arith.constant 0 : i32
    %c0_i32_0 = arith.constant 0 : i32
    %c0_i32_1 = arith.constant 0 : i32
    return %c0_i32, %c0_i32_0 : i32, i32
  }
  func.func @transform_29(%arg0: i32) -> (i32, i32) {
    %c0_i32 = arith.constant 0 : i32
    %c0_i32_0 = arith.constant 0 : i32
    %c0_i32_1 = arith.constant 0 : i32
    return %c0_i32, %c0_i32_0 : i32, i32
  }
  func.func @transform_30(%arg0: i32) -> (i32, i32) {
    %c0_i32 = arith.constant 0 : i32
    %c0_i32_0 = arith.constant 0 : i32
    %c0_i32_1 = arith.constant 0 : i32
    return %c0_i32, %c0_i32_0 : i32, i32
  }
  func.func @transform_31(%arg0: i32) -> (i32, i32) {
    %c0_i32 = arith.constant 0 : i32
    %c0_i32_0 = arith.constant 0 : i32
    %c0_i32_1 = arith.constant 0 : i32
    return %c0_i32, %c0_i32_0 : i32, i32
  }
  func.func @transform_32(%arg0: i32) -> (i32, i32) {
    %c0_i32 = arith.constant 0 : i32
    %c0_i32_0 = arith.constant 0 : i32
    %c0_i32_1 = arith.constant 0 : i32
    return %c0_i32, %c0_i32_0 : i32, i32
  }
  func.func @transform_33(%arg0: i32) -> (i32, i32) {
    %c0_i32 = arith.constant 0 : i32
    %c0_i32_0 = arith.constant 0 : i32
    return %arg0, %c0_i32 : i32, i32
  }
}

</mosaic_0001>

<bundles_post_ra>
// kernel: tpu_custom_call.1
= control target key start
LH: loop header
LB: loop body
LE: loop exit
PB: predicated region body
PF: predicated region fallthrough
CT: control target
= control target key end

     0   :  { %s3378_s6 = smov 1   ;;  %s3379_s10 = smov 2   ;;  %s3828_s0 = inlined_call_operand.smem [shape: u32[34], index: -1, kind: input, shape index: {}] }
   0x1   :  { %s3445_s5 = sld [smem:[%s3828_s0]]   ;;  %s3380_s14 = smov 3  }
   0x2   :  { %s3450_s9 = sld [smem:[%s3828_s0 + %s3378_s6]]   ;;  %s3381_s18 = smov 4  }
   0x3   :  { %s3455_s13 = sld [smem:[%s3828_s0 + %s3379_s10]]   ;;  %s3382_s22 = smov 5  }
   0x4   :  { %s3460_s17 = sld [smem:[%s3828_s0 + %s3380_s14]]   ;;  %s3383_s26 = smov 6  }
   0x5   :  { %s3465_s21 = sld [smem:[%s3828_s0 + %s3381_s18]]   ;;  %s3384_s30 = smov 7  }
   0x6   :  { %s3470_s25 = sld [smem:[%s3828_s0 + %s3382_s22]]   ;;  %s3385_s4 = smov 8  }
   0x7   :  { %s3475_s29 = sld [smem:[%s3828_s0 + %s3383_s26]]   ;;  %s3386_s10 = smov 9  }
   0x8   :  { %s3480_s3 = sld [smem:[%s3828_s0 + %s3384_s30]]   ;;  %s3387_s15 = smov 10  }
   0x9   :  { %s3485_s8 = sld [smem:[%s3828_s0 + %s3385_s4]]   ;;  %s3388_s20 = smov 11  }
   0xa   :  { %s3490_s14 = sld [smem:[%s3828_s0 + %s3386_s10]]   ;;  %s3389_s26 = smov 12  }
   0xb   :  { %s3495_s19 = sld [smem:[%s3828_s0 + %s3387_s15]]   ;;  %s3390_s1 = smov 13  }
   0xc   :  { %s3500_s24 = sld [smem:[%s3828_s0 + %s3388_s20]]   ;;  %s3391_s7 = smov 14  }
   0xd   :  { %s3505_s30 = sld [smem:[%s3828_s0 + %s3389_s26]]   ;;  %s3392_s15 = smov 15  }
   0xe   :  { %s3510_s6 = sld [smem:[%s3828_s0 + %s3390_s1]]   ;;  %s3393_s22 = smov 16  }
   0xf   :  { %s3515_s12 = sld [smem:[%s3828_s0 + %s3391_s7]]   ;;  %s3394_s28 = smov 17  }
  0x10   :  { %3833 = sst [smem:[#allocation36_spill]] %s3490_s14  ;;  %s3395_s7 = smov 18  }
  0x11   :  { %s3520_s20 = sld [smem:[%s3828_s0 + %s3392_s15]]   ;;  %s3396_s15 = smov 19  }
  0x12   :  { %s3525_s27 = sld [smem:[%s3828_s0 + %s3393_s22]]   ;;  %s3397_s22 = smov 20  }
  0x13   :  { %s3530_s4 = sld [smem:[%s3828_s0 + %s3394_s28]]   ;;  %s3398_s28 = smov 21  }
  0x14   :  { %s3550_s14 = sld [smem:[%s3828_s0 + %s3398_s28]]   ;;  %s3402_s28 = smov 25  }
  0x15   :  { %3834 = sst [smem:[#allocation37_spill]] %s3515_s12 }
  0x16   :  { %s3535_s12 = sld [smem:[%s3828_s0 + %s3395_s7]]   ;;  %s3399_s7 = smov 22  }
  0x17   :  { %3835 = sst [smem:[#allocation38_spill]] %s3520_s20 }
  0x18   :  { %3836 = sst [smem:[#allocation39_spill]] %s3525_s27 }
  0x19   :  { %s3540_s20 = sld [smem:[%s3828_s0 + %s3396_s15]]   ;;  %s3400_s15 = smov 23  }
  0x1a   :  { %s3545_s27 = sld [smem:[%s3828_s0 + %s3397_s22]]   ;;  %s3401_s22 = smov 24  }
  0x1b   :  { %3840 = sst [smem:[#allocation43_spill]] %s3550_s14 }
  0x1c   :  { %3837 = sst [smem:[#allocation40_spill]] %s3535_s12 }
  0x1d   :  { %s3555_s12 = sld [smem:[%s3828_s0 + %s3399_s7]]   ;;  %s3403_s7 = smov 26  }
  0x1e   :  { %s3570_s14 = sld [smem:[%s3828_s0 + %s3402_s28]]   ;;  %s3406_s28 = smov 29  }
  0x1f   :  { %3838 = sst [smem:[#allocation41_spill]] %s3540_s20 }
  0x20   :  { %3839 = sst [smem:[#allocation42_spill]] %s3545_s27 }
  0x21   :  { %s3560_s20 = sld [smem:[%s3828_s0 + %s3400_s15]]   ;;  %s3404_s15 = smov 27  }
  0x22   :  { %s3565_s27 = sld [smem:[%s3828_s0 + %s3401_s22]]   ;;  %s3405_s22 = smov 28  }
  0x23   :  { %3841 = sst [smem:[#allocation44_spill]] %s3555_s12 }
  0x24   :  { %3844 = sst [smem:[#allocation47_spill]] %s3570_s14 }
  0x25   :  { %s3575_s12 = sld [smem:[%s3828_s0 + %s3403_s7]]   ;;  %s3407_s7 = smov 30  }
  0x26   :  { %s3590_s14 = sld [smem:[%s3828_s0 + %s3406_s28]]   ;;  %s3410_s28 = smov 33  }
  0x27   :  { %3842 = sst [smem:[#allocation45_spill]] %s3560_s20 }
  0x28   :  { %3843 = sst [smem:[#allocation46_spill]] %s3565_s27 }
  0x29   :  { %s3580_s20 = sld [smem:[%s3828_s0 + %s3404_s15]]   ;;  %s3408_s15 = smov 31  }
  0x2a   :  { %s3585_s27 = sld [smem:[%s3828_s0 + %s3405_s22]]   ;;  %s3409_s22 = smov 32  }
  0x2b   :  { %3845 = sst [smem:[#allocation48_spill]] %s3575_s12 }
  0x2c   :  { %3848 = sst [smem:[#allocation51_spill]] %s3590_s14 }
  0x2d   :  { %s3595_s12 = sld [smem:[%s3828_s0 + %s3407_s7]]  }
  0x2e   :  { %s3610_s14 = sld [smem:[%s3828_s0 + %s3410_s28]]  }
  0x2f   :  { %3846 = sst [smem:[#allocation49_spill]] %s3580_s20 }
  0x30   :  { %3847 = sst [smem:[#allocation50_spill]] %s3585_s27 }
  0x31   :  { %s3600_s20 = sld [smem:[%s3828_s0 + %s3408_s15]]  }
  0x32   :  { %s3605_s27 = sld [smem:[%s3828_s0 + %s3409_s22]]  }
  0x33   :  { %72 = vsyncpa [#allocation3], 0 }
  0x34   :  { %73 = vsyncpa [#allocation6], 0 }
  0x35   :  { %74 = vsyncpa [#allocation9], 0 }
  0x36   :  { %75 = vsyncpa [#allocation12], 0 }
  0x37   :  { %76 = vsyncpa [#allocation15], 0 }
  0x38   :  { %77 = vsyncpa [#allocation18], 0 }
  0x39   :  { %78 = vsyncpa [#allocation21], 0 }
  0x3a   :  { %79 = vsyncpa [#allocation24], 0 }
  0x3b   :  { %80 = vsyncpa [#allocation4], 0  ;;  %s3411_s7 = smov [#allocation5]   ;;  %s3412_s11 = smov [#allocation8]  }
  0x3c   :  { %s97_s10 = sshll.u32 %s3411_s7, 4  ;;  %s117_s15 = sshll.u32 %s3412_s11, 4  ;;  %s98_s10 = int_to_ptr.vmem [resolvable:$true] %s97_s10  ;;  %s118_s15 = int_to_ptr.vmem [resolvable:$true] %s117_s15 }
  0x3d   :  { %s3008_s0 = scalar_lea.hbm %s3450_s9, 64 }
  0x3e   :  { %p3009_p0 = scmp.ne.s32.totalorder %s3450_s9, %s3008_s0  ;;  %p3012_p1 = scmp.lt.u32.totalorder %s3008_s0, %s3450_s9 }
  0x40   :  { %p3014_p2 = pnand %p3012_p1, %p3009_p0 }
  0x42   :  { %3017 = shalt.err (!%p3014_p2)
}
  0x43   :  { %s3018_s16 = scalar_lea.vmem %s98_s10, 64  ;;  %p3023_p4 = scmp.lt.s32.totalorder %s98_s10, %s98_s10 }
  0x44   :  { %p3019_p3 = scmp.ne.s32.totalorder %s98_s10, %s3018_s16  ;;  %p3024_p5 = scmp.lt.s32.totalorder %s3018_s16, %s3018_s16 }
  0x46   :  { %p3025_p6 = por %p3024_p5, %p3023_p4 }
  0x48   :  { %p3026_p7 = pnand %p3025_p6, %p3019_p3 }
  0x4a   :  { %3029 = shalt.err (!%p3026_p7)
}
  0x4b   :  { %100 = dma.hbm_to_vmem [thread:$0]  %s3450_s9, 64, %s98_s10, [#allocation6]  }
  0x4c   :  { %s3030_s18 = scalar_lea.hbm %s3460_s17, 16 }
  0x4d   :  { %p3031_p8 = scmp.ne.s32.totalorder %s3460_s17, %s3030_s18  ;;  %p3034_p9 = scmp.lt.u32.totalorder %s3030_s18, %s3460_s17 }
  0x4f   :  { %p3036_p10 = pnand %p3034_p9, %p3031_p8 }
  0x51   :  { %3039 = shalt.err (!%p3036_p10)
}
  0x52   :  { %s3040_s22 = scalar_lea.vmem %s118_s15, 16  ;;  %s3044_s23 = scalar_lea.vmem %s118_s15, 32 }
  0x53   :  { %p3041_p11 = scmp.ne.s32.totalorder %s118_s15, %s3040_s22  ;;  %p3045_p12 = scmp.lt.s32.totalorder %s118_s15, %s118_s15 }
  0x54   :  { %p3046_p13 = scmp.lt.s32.totalorder %s3044_s23, %s3040_s22 }
  0x56   :  { %p3047_p0 = por %p3046_p13, %p3045_p12 }
  0x58   :  { %p3048_p1 = pnand %p3047_p0, %p3041_p11 }
  0x5a   :  { %3051 = shalt.err (!%p3048_p1)
}
  0x5b   :  { %120 = dma.hbm_to_vmem [thread:$0]  %s3460_s17, 16, %s118_s15, [#allocation9]  }
  0x5c   :  { %s3413_s26 = smov [#allocation11]   ;;  %s3052_s28 = scalar_lea.hbm %s3470_s25, 512 }
  0x5d   :  { %s136_s9 = sshll.u32 %s3413_s26, 4  ;;  %p3053_p2 = scmp.ne.s32.totalorder %s3470_s25, %s3052_s28  ;;  %s137_s9 = int_to_ptr.vmem [resolvable:$true] %s136_s9 }
  0x5e   :  { %p3056_p3 = scmp.lt.u32.totalorder %s3052_s28, %s3470_s25 }
  0x60   :  { %p3058_p4 = pnand %p3056_p3, %p3053_p2 }
  0x62   :  { %3061 = shalt.err (!%p3058_p4)
}
  0x63   :  { %s3062_s1 = scalar_lea.vmem %s137_s9, 512  ;;  %p3067_p6 = scmp.lt.s32.totalorder %s137_s9, %s137_s9 }
  0x64   :  { %p3063_p5 = scmp.ne.s32.totalorder %s137_s9, %s3062_s1  ;;  %p3068_p7 = scmp.lt.s32.totalorder %s3062_s1, %s3062_s1 }
  0x66   :  { %p3069_p8 = por %p3068_p7, %p3067_p6 }
  0x68   :  { %p3070_p9 = pnand %p3069_p8, %p3063_p5 }
  0x6a   :  { %3073 = shalt.err (!%p3070_p9)
}
  0x6b   :  { %s3414_s2 = smov 64   ;;  %s3415_s17 = smov 4  }
  0x6c   :  { %142 = dma.hbm_to_vmem [thread:$0]  %s3470_s25, 512, %s137_s9, [#allocation12], %s3414_s2, %s3414_s2, %s3415_s17  }
  0x6d   :  { %s3416_s7 = smov [#allocation14]   ;;  %s3417_s11 = smov [#allocation17]  }
  0x6e   :  { %s159_s10 = sshll.u32 %s3416_s7, 4  ;;  %s181_s15 = sshll.u32 %s3417_s11, 4  ;;  %s160_s10 = int_to_ptr.vmem [resolvable:$true] %s159_s10  ;;  %s182_s15 = int_to_ptr.vmem [resolvable:$true] %s181_s15 }
  0x6f   :  { %s3074_s0 = scalar_lea.hbm %s3480_s3, 16 }
  0x70   :  { %p3075_p10 = scmp.ne.s32.totalorder %s3480_s3, %s3074_s0  ;;  %p3078_p11 = scmp.lt.u32.totalorder %s3074_s0, %s3480_s3 }
  0x72   :  { %p3080_p12 = pnand %p3078_p11, %p3075_p10 }
  0x74   :  { %3083 = shalt.err (!%p3080_p12)
}
  0x75   :  { %s3084_s16 = scalar_lea.vmem %s160_s10, 16  ;;  %s3088_s18 = scalar_lea.vmem %s160_s10, 32 }
  0x76   :  { %p3085_p13 = scmp.ne.s32.totalorder %s160_s10, %s3084_s16  ;;  %p3089_p0 = scmp.lt.s32.totalorder %s160_s10, %s160_s10 }
  0x77   :  { %p3090_p1 = scmp.lt.s32.totalorder %s3088_s18, %s3084_s16 }
  0x79   :  { %p3091_p2 = por %p3090_p1, %p3089_p0 }
  0x7b   :  { %p3092_p3 = pnand %p3091_p2, %p3085_p13 }
  0x7d   :  { %3095 = shalt.err (!%p3092_p3)
}
  0x7e   :  { %162 = dma.hbm_to_vmem [thread:$0]  %s3480_s3, 16, %s160_s10, [#allocation15]  }
  0x7f   :  { %s3096_s25 = scalar_lea.hbm %s3495_s19, 32 }
  0x80   :  { %p3097_p4 = scmp.ne.s32.totalorder %s3495_s19, %s3096_s25  ;;  %p3100_p5 = scmp.lt.u32.totalorder %s3096_s25, %s3495_s19 }
  0x82   :  { %p3102_p6 = pnand %p3100_p5, %p3097_p4 }
  0x84   :  { %3105 = shalt.err (!%p3102_p6)
}
  0x85   :  { %s3106_s22 = scalar_lea.vmem %s182_s15, 32  ;;  %p3111_p8 = scmp.lt.s32.totalorder %s182_s15, %s182_s15 }
  0x86   :  { %p3107_p7 = scmp.ne.s32.totalorder %s182_s15, %s3106_s22  ;;  %p3112_p9 = scmp.lt.s32.totalorder %s3106_s22, %s3106_s22 }
  0x88   :  { %p3113_p10 = por %p3112_p9, %p3111_p8 }
  0x8a   :  { %p3114_p11 = pnand %p3113_p10, %p3107_p7 }
  0x8c   :  { %3117 = shalt.err (!%p3114_p11)
}
  0x8d   :  { %184 = dma.hbm_to_vmem [thread:$0]  %s3495_s19, 32, %s182_s15, [#allocation18]  }
  0x8e   :  { %s3418_s23 = smov [#allocation20]   ;;  %s3419_s26 = smov [#allocation23]  }
  0x8f   :  { %s201_s3 = sshll.u32 %s3418_s23, 4  ;;  %s228_s9 = sshll.u32 %s3419_s26, 4  ;;  %s202_s3 = int_to_ptr.vmem [resolvable:$true] %s201_s3  ;;  %s229_s9 = int_to_ptr.vmem [resolvable:$true] %s228_s9 }
  0x90   :  { %s3118_s28 = scalar_lea.hbm %s3505_s30, 32 }
  0x91   :  { %p3119_p12 = scmp.ne.s32.totalorder %s3505_s30, %s3118_s28  ;;  %p3122_p13 = scmp.lt.u32.totalorder %s3118_s28, %s3505_s30 }
  0x93   :  { %p3124_p0 = pnand %p3122_p13, %p3119_p12 }
  0x95   :  { %3127 = shalt.err (!%p3124_p0)
}
  0x96   :  { %s3128_s1 = scalar_lea.vmem %s202_s3, 32  ;;  %p3133_p2 = scmp.lt.s32.totalorder %s202_s3, %s202_s3 }
  0x97   :  { %p3129_p1 = scmp.ne.s32.totalorder %s202_s3, %s3128_s1  ;;  %p3134_p3 = scmp.lt.s32.totalorder %s3128_s1, %s3128_s1 }
  0x99   :  { %p3135_p4 = por %p3134_p3, %p3133_p2 }
  0x9b   :  { %p3136_p5 = pnand %p3135_p4, %p3129_p1 }
  0x9d   :  { %3139 = shalt.err (!%p3136_p5)
}
  0x9e   :  { %204 = dma.hbm_to_vmem [thread:$0]  %s3505_s30, 32, %s202_s3, [#allocation21]  }
  0x9f   :  { %s3140_s19 = scalar_lea.hbm %s3530_s4, 8192 }
  0xa0   :  { %p3141_p6 = scmp.ne.s32.totalorder %s3530_s4, %s3140_s19  ;;  %p3144_p7 = scmp.lt.u32.totalorder %s3140_s19, %s3530_s4 }
  0xa2   :  { %p3146_p8 = pnand %p3144_p7, %p3141_p6 }
  0xa4   :  { %3149 = shalt.err (!%p3146_p8)
}
  0xa5   :  { %s3150_s7 = scalar_lea.vmem %s229_s9, 8192  ;;  %p3155_p10 = scmp.lt.s32.totalorder %s229_s9, %s229_s9 }
  0xa6   :  { %p3151_p9 = scmp.ne.s32.totalorder %s229_s9, %s3150_s7  ;;  %p3156_p11 = scmp.lt.s32.totalorder %s3150_s7, %s3150_s7 }
  0xa8   :  { %p3157_p12 = por %p3156_p11, %p3155_p10 }
  0xaa   :  { %p3158_p13 = pnand %p3157_p12, %p3151_p9 }
  0xac   :  { %3161 = shalt.err (!%p3158_p13)
}
  0xad   :  { %s3420_s10 = smov 128   ;;  %s3421_s11 = smov 8  }
  0xae   :  { %234 = dma.hbm_to_vmem [thread:$0]  %s3530_s4, 8192, %s229_s9, [#allocation24], %s3420_s10, %s3420_s10, %s3421_s11  }
  0xaf   :  { %s3422_s30 = smov [#allocation2]   ;;  %s3423_s0 = smov [#allocation7]  }
  0xb0   :  { %s87_s15 = sshll.u32 %s3422_s30, 4  ;;  %s107_s16 = sshll.u32 %s3423_s0, 4  ;;  %s88_s15 = int_to_ptr.vmem [resolvable:$true] %s87_s15  ;;  %s108_s16 = int_to_ptr.vmem [resolvable:$true] %s107_s16 }
  0xb1   :  { %s3162_s18 = scalar_lea.hbm %s3445_s5, 128 }
  0xb2   :  { %p3163_p0 = scmp.ne.s32.totalorder %s3445_s5, %s3162_s18  ;;  %p3166_p1 = scmp.lt.u32.totalorder %s3162_s18, %s3445_s5 }
  0xb4   :  { %p3168_p2 = pnand %p3166_p1, %p3163_p0 }
  0xb6   :  { %3171 = shalt.err (!%p3168_p2)
}
  0xb7   :  { %s3172_s25 = scalar_lea.vmem %s88_s15, 128  ;;  %p3177_p4 = scmp.lt.s32.totalorder %s88_s15, %s88_s15 }
  0xb8   :  { %p3173_p3 = scmp.ne.s32.totalorder %s88_s15, %s3172_s25  ;;  %p3178_p5 = scmp.lt.s32.totalorder %s3172_s25, %s3172_s25 }
  0xba   :  { %p3179_p6 = por %p3178_p5, %p3177_p4 }
  0xbc   :  { %p3180_p7 = pnand %p3179_p6, %p3173_p3 }
  0xbe   :  { %3183 = shalt.err (!%p3180_p7)
}
  0xbf   :  { %90 = dma.hbm_to_vmem [thread:$0]  %s3445_s5, 128, %s88_s15, [#allocation3]  }
  0xc0   :  { %s3184_s4 = scalar_lea.hbm %s3455_s13, 16 }
  0xc1   :  { %p3185_p8 = scmp.ne.s32.totalorder %s3455_s13, %s3184_s4  ;;  %p3188_p9 = scmp.lt.u32.totalorder %s3184_s4, %s3455_s13 }
  0xc3   :  { %p3190_p10 = pnand %p3188_p9, %p3185_p8 }
  0xc5   :  { %3193 = shalt.err (!%p3190_p10)
}
  0xc6   :  { %s3194_s22 = scalar_lea.vmem %s108_s16, 16  ;;  %s3198_s23 = scalar_lea.vmem %s108_s16, 32 }
  0xc7   :  { %p3195_p11 = scmp.ne.s32.totalorder %s108_s16, %s3194_s22  ;;  %p3199_p12 = scmp.lt.s32.totalorder %s108_s16, %s108_s16 }
  0xc8   :  { %p3200_p13 = scmp.lt.s32.totalorder %s3198_s23, %s3194_s22 }
  0xca   :  { %p3201_p0 = por %p3200_p13, %p3199_p12 }
  0xcc   :  { %p3202_p1 = pnand %p3201_p0, %p3195_p11 }
  0xce   :  { %3205 = shalt.err (!%p3202_p1)
}
  0xcf   :  { %110 = dma.hbm_to_vmem [thread:$0]  %s3455_s13, 16, %s108_s16, [#allocation6]  }
  0xd0   :  { %s3424_s5 = smov [#allocation10]   ;;  %s3425_s26 = smov [#allocation13]  }
  0xd1   :  { %s127_s3 = sshll.u32 %s3424_s5, 4  ;;  %s149_s9 = sshll.u32 %s3425_s26, 4  ;;  %s128_s3 = int_to_ptr.vmem [resolvable:$true] %s127_s3  ;;  %s150_s9 = int_to_ptr.vmem [resolvable:$true] %s149_s9 }
  0xd2   :  { %s3206_s28 = scalar_lea.hbm %s3465_s21, 16 }
  0xd3   :  { %p3207_p2 = scmp.ne.s32.totalorder %s3465_s21, %s3206_s28  ;;  %p3210_p3 = scmp.lt.u32.totalorder %s3206_s28, %s3465_s21 }
  0xd5   :  { %p3212_p4 = pnand %p3210_p3, %p3207_p2 }
  0xd7   :  { %3215 = shalt.err (!%p3212_p4)
}
  0xd8   :  { %s3216_s1 = scalar_lea.vmem %s128_s3, 16  ;;  %s3220_s19 = scalar_lea.vmem %s128_s3, 32 }
  0xd9   :  { %p3217_p5 = scmp.ne.s32.totalorder %s128_s3, %s3216_s1  ;;  %p3221_p6 = scmp.lt.s32.totalorder %s128_s3, %s128_s3 }
  0xda   :  { %p3222_p7 = scmp.lt.s32.totalorder %s3220_s19, %s3216_s1 }
  0xdc   :  { %p3223_p8 = por %p3222_p7, %p3221_p6 }
  0xde   :  { %p3224_p9 = pnand %p3223_p8, %p3217_p5 }
  0xe0   :  { %3227 = shalt.err (!%p3224_p9)
}
  0xe1   :  { %130 = dma.hbm_to_vmem [thread:$0]  %s3465_s21, 16, %s128_s3, [#allocation9]  }
  0xe2   :  { %s3228_s13 = scalar_lea.hbm %s3475_s29, 16 }
  0xe3   :  { %p3229_p10 = scmp.ne.s32.totalorder %s3475_s29, %s3228_s13  ;;  %p3232_p11 = scmp.lt.u32.totalorder %s3228_s13, %s3475_s29 }
  0xe5   :  { %p3234_p12 = pnand %p3232_p11, %p3229_p10 }
  0xe7   :  { %3237 = shalt.err (!%p3234_p12)
}
  0xe8   :  { %s3238_s7 = scalar_lea.vmem %s150_s9, 16  ;;  %s3242_s10 = scalar_lea.vmem %s150_s9, 32 }
  0xe9   :  { %p3239_p13 = scmp.ne.s32.totalorder %s150_s9, %s3238_s7  ;;  %p3243_p0 = scmp.lt.s32.totalorder %s150_s9, %s150_s9 }
  0xea   :  { %p3244_p1 = scmp.lt.s32.totalorder %s3242_s10, %s3238_s7 }
  0xec   :  { %p3245_p2 = por %p3244_p1, %p3243_p0 }
  0xee   :  { %p3246_p3 = pnand %p3245_p2, %p3239_p13 }
  0xf0   :  { %3249 = shalt.err (!%p3246_p3)
}
  0xf1   :  { %152 = dma.hbm_to_vmem [thread:$0]  %s3475_s29, 16, %s150_s9, [#allocation12]  }
  0xf2   :  { %s3426_s21 = smov [#allocation16]   ;;  %s3427_s30 = smov [#allocation19]  }
  0xf3   :  { %s169_s11 = sshll.u32 %s3426_s21, 4  ;;  %s191_s15 = sshll.u32 %s3427_s30, 4  ;;  %s170_s11 = int_to_ptr.vmem [resolvable:$true] %s169_s11  ;;  %s192_s15 = int_to_ptr.vmem [resolvable:$true] %s191_s15 }
  0xf4   :  { %s3250_s0 = scalar_lea.hbm %s3485_s8, 16 }
  0xf5   :  { %p3251_p4 = scmp.ne.s32.totalorder %s3485_s8, %s3250_s0  ;;  %p3254_p5 = scmp.lt.u32.totalorder %s3250_s0, %s3485_s8 }
  0xf7   :  { %p3256_p6 = pnand %p3254_p5, %p3251_p4 }
  0xf9   :  { %3259 = shalt.err (!%p3256_p6)
}
  0xfa   :  { %s3260_s16 = scalar_lea.vmem %s170_s11, 16  ;;  %s3264_s18 = scalar_lea.vmem %s170_s11, 32 }
  0xfb   :  { %p3261_p7 = scmp.ne.s32.totalorder %s170_s11, %s3260_s16  ;;  %p3265_p8 = scmp.lt.s32.totalorder %s170_s11, %s170_s11 }
  0xfc   :  { %p3266_p9 = scmp.lt.s32.totalorder %s3264_s18, %s3260_s16 }
  0xfe   :  { %p3267_p10 = por %p3266_p9, %p3265_p8 }
 0x100   :  { %p3268_p11 = pnand %p3267_p10, %p3261_p7 }
 0x102   :  { %3271 = shalt.err (!%p3268_p11)
}
 0x103   :  { %172 = dma.hbm_to_vmem [thread:$0]  %s3485_s8, 16, %s170_s11, [#allocation15]  }
 0x104   :  { %s3272_s29 = scalar_lea.hbm %s3500_s24, 32 }
 0x105   :  { %p3273_p12 = scmp.ne.s32.totalorder %s3500_s24, %s3272_s29  ;;  %p3276_p13 = scmp.lt.u32.totalorder %s3272_s29, %s3500_s24 }
 0x107   :  { %p3278_p0 = pnand %p3276_p13, %p3273_p12 }
 0x109   :  { %3281 = shalt.err (!%p3278_p0)
}
 0x10a   :  { %s3282_s25 = scalar_lea.vmem %s192_s15, 32  ;;  %p3287_p2 = scmp.lt.s32.totalorder %s192_s15, %s192_s15 }
 0x10b   :  { %p3283_p1 = scmp.ne.s32.totalorder %s192_s15, %s3282_s25  ;;  %p3288_p3 = scmp.lt.s32.totalorder %s3282_s25, %s3282_s25 }
 0x10d   :  { %p3289_p4 = por %p3288_p3, %p3287_p2 }
 0x10f   :  { %p3290_p5 = pnand %p3289_p4, %p3283_p1 }
 0x111   :  { %3293 = shalt.err (!%p3290_p5)
}
 0x112   :  { %194 = dma.hbm_to_vmem [thread:$0]  %s3500_s24, 32, %s192_s15, [#allocation18]  }
 0x113   :  { %s3428_s4 = smov [#allocation22]   ;;  %s3294_s22 = scalar_lea.hbm %s3510_s6, 8192 }
 0x114   :  { %s210_s8 = sshll.u32 %s3428_s4, 4  ;;  %p3295_p6 = scmp.ne.s32.totalorder %s3510_s6, %s3294_s22  ;;  %s211_s8 = int_to_ptr.vmem [resolvable:$true] %s210_s8 }
 0x115   :  { %p3298_p7 = scmp.lt.u32.totalorder %s3294_s22, %s3510_s6 }
 0x117   :  { %p3300_p8 = pnand %p3298_p7, %p3295_p6 }
 0x119   :  { %3303 = shalt.err (!%p3300_p8)
}
 0x11a   :  { %s3304_s23 = scalar_lea.vmem %s211_s8, 8192  ;;  %p3309_p10 = scmp.lt.s32.totalorder %s211_s8, %s211_s8 }
 0x11b   :  { %p3305_p9 = scmp.ne.s32.totalorder %s211_s8, %s3304_s23  ;;  %p3310_p11 = scmp.lt.s32.totalorder %s3304_s23, %s3304_s23 }
 0x11d   :  { %p3311_p12 = por %p3310_p11, %p3309_p10 }
 0x11f   :  { %p3312_p13 = pnand %p3311_p12, %p3305_p9 }
 0x121   :  { %3315 = shalt.err (!%p3312_p13)
}
 0x122   :  { %s3429_s5 = smov 256   ;;  %s3849_s3 = sld [smem:[#allocation43_spill]] }
 0x123   :  { %s3430_s24 = smov 16   ;;  %s3431_s26 = smov [#allocation25]  }
 0x124   :  { %216 = dma.hbm_to_vmem [thread:$0]  %s3510_s6, 8192, %s211_s8, [#allocation21], %s3429_s5, %s3429_s5, %s3430_s24  }
 0x125   :  { %s246_s9 = sshll.u32 %s3431_s26, 4  ;;  %s247_s9 = int_to_ptr.vmem [resolvable:$true] %s246_s9 }
 0x128   :  { %s3316_s28 = scalar_lea.hbm %s3849_s3, 2048 }
 0x129   :  { %p3317_p0 = scmp.ne.s32.totalorder %s3849_s3, %s3316_s28  ;;  %p3320_p1 = scmp.lt.u32.totalorder %s3316_s28, %s3849_s3 }
 0x12b   :  { %p3322_p2 = pnand %p3320_p1, %p3317_p0 }
 0x12d   :  { %3325 = shalt.err (!%p3322_p2)
}
 0x12e   :  { %s3326_s1 = scalar_lea.vmem %s247_s9, 2048  ;;  %p3331_p4 = scmp.lt.s32.totalorder %s247_s9, %s247_s9 }
 0x12f   :  { %p3327_p3 = scmp.ne.s32.totalorder %s247_s9, %s3326_s1  ;;  %p3332_p5 = scmp.lt.s32.totalorder %s3326_s1, %s3326_s1 }
 0x131   :  { %p3333_p6 = por %p3332_p5, %p3331_p4 }
 0x133   :  { %p3334_p7 = pnand %p3333_p6, %p3327_p3 }
 0x135   :  { %3337 = shalt.err (!%p3334_p7)
}
 0x136   :  { %252 = dma.hbm_to_vmem [thread:$0]  %s3849_s3, 2048, %s247_s9, [#allocation24], %s3414_s2, %s3414_s2, %s3415_s17  }
 0x137   :  { %3360 = dma.done.wait [#allocation3], 128  }
 0x138   :  { %3361 = vsyncadd [#allocation3], 4294967168 }
 0x139   :  { %3362 = dma.done.wait [#allocation6], 80  }
 0x13a   :  { %3363 = vsyncadd [#allocation6], 4294967216 }
 0x13b   :  { %3364 = dma.done.wait [#allocation9], 32  }
 0x13c   :  { %3365 = vsyncadd [#allocation9], 4294967264 }
 0x13d   :  { %3366 = dma.done.wait [#allocation12], 528  }
 0x13e   :  { %3367 = vsyncadd [#allocation12], 4294966768 }
 0x13f   :  { %3368 = dma.done.wait [#allocation15], 32  }
 0x140   :  { %3369 = vsyncadd [#allocation15], 4294967264 }
 0x141   :  { %3370 = dma.done.wait [#allocation18], 64  }
 0x142   :  { %3371 = vsyncadd [#allocation18], 4294967232 }
 0x143   :  { %3372 = dma.done.wait [#allocation21], 8224  }
 0x144   :  { %3373 = vsyncadd [#allocation21], 4294959072 }
 0x145   :  { %3374 = dma.done.wait [#allocation24], 10240  }
 0x146   :  { %3375 = vsyncadd [#allocation24], 4294957056  ;;  %vm335_vm0 = vcmask 1041408   ;;  %v3432_v0 = vmov 0.0   ;;  %vm336_vm1 = vcmask 1042432   ;;  %v3433_v1 = vmov 65535  }
 0x147   :  { %2621 = vmatprep.subr.bf16.mxu1 %v3432_v0  ;;  %2627 = vmatprep.subr.bf16.mxu0 %v3432_v0  ;;  %v337_v2 = vsel %vm335_vm0, 4294967295, %v3433_v1  ;;  %vm3434_vm2 = vmmov 0   ;;  %v322_v4 = vld [vmem:[#allocation5] sm:$0x7]  ;;  %v321_v5 = vld [vmem:[#allocation2] sm:$0xff]  ;;  %vm331_vm3 = vcmask 39936  }
 0x148   :  { %2623 = vmatprep.mubr.msk.bf16.mxu1 %vm3434_vm2, %v3432_v0  ;;  %2635 = vmatprep.mubr.msk.bf16.mxu0 %vm3434_vm2, %v3432_v0  ;;  %v338_v3 = vsel %vm336_vm1, %v337_v2, 0  ;;  %v324_v7 = vpack.c.bf16 %v321_v5, %v321_v5  ;;  %v2379_v8 = vld [vmem:[#allocation7] ss:$0 sm:$0xff]  ;;  %vm385_vm4 = vcmask 523264   ;;  %v2744_v21 = vld [vmem:[#allocation11] sm:$0xff]   ;;  %v2745_v22 = vld [vmem:[#allocation11 + $0x8] sm:$0xff]  }
 0x149   :  { %v340_v6 = vand.u32 %v338_v3, %v322_v4  ;;  %2628 = vmatpush3.bf16.msra.mxu0 %v2744_v21  ;;  %v2746_v23 = vld [vmem:[#allocation11 + $0x10] sm:$0xff]   ;;  %v2747_v24 = vld [vmem:[#allocation11 + $0x18] sm:$0xff]   ;;  %s3850_s6 = sld [smem:[#allocation36_spill]]  ;;  %v2383_v35 = vld [vmem:[#allocation13] ss:$0 sm:$0xff]  ;;  %v3435_v57 = vmov 0  }
 0x14a   :  { %2629 = vmatprep.subr.bf16.mxu0 %v3432_v0  ;;  %v2381_v29 = vld [vmem:[#allocation8] ss:$0 sm:$0xff]  ;;  %v2382_v31 = vld [vmem:[#allocation10] ss:$0 sm:$0xff]  ;;  %v2389_v4 = vld [vmem:[#allocation14] ss:$0 sm:$0xff] }
 0x14b   :  { %2622 = vmatpush3.bf16.msra.mxu1 %v340_v6  ;;  %v2390_v6 = vld [vmem:[#allocation16] ss:$0 sm:$0xff]  ;;  %s3851_s2 = sld [smem:[#allocation37_spill]]  ;;  %s3852_s17 = sld [smem:[#allocation38_spill]]  ;;  %vm2279_vm5 = vcmask 261120  }
 0x14c   :  { %s3853_s19 = sld [smem:[#allocation39_spill]]  ;;  %s3854_s13 = sld [smem:[#allocation40_spill]] }
 0x14d   :  { %2630 = vmatpush3.bf16.msra.mxu0 %v2745_v22  ;;  %s3855_s7 = sld [smem:[#allocation41_spill]]  ;;  %s3856_s10 = sld [smem:[#allocation42_spill]] }
 0x14e   :  { %2624 = vmatmul.mubr.msk.bf16.vlgmr.msra.gmra.mrb[0].mxu1 %vm331_vm3, %v324_v7  ;;  %2631 = vmatprep.subr.bf16.mxu0 %v3432_v0  ;;  %s3857_s21 = sld [smem:[#allocation44_spill]]  ;;  %s3858_s11 = sld [smem:[#allocation47_spill]] }
 0x14f   :  { %v2748_v42 = vld [vmem:[%s3850_s6] ss:$8 sps:$4 sm:$0xff]   ;;  %v2750_v43 = vld [vmem:[%s3850_s6 + $0x4] ss:$8 sps:$4 sm:$0xff]   ;;  %v2753_v44 = vld [vmem:[%s3850_s6 + $0x14] ss:$8 sps:$4 sm:$0xff]  }
 0x150   :  { %v2751_v45 = vld [vmem:[%s3850_s6 + $0x10] ss:$8 sps:$4 sm:$0xff]   ;;  %v2756_v46 = vld [vmem:[%s3850_s6 + $0x24] ss:$8 sps:$4 sm:$0xff]   ;;  %v2754_v47 = vld [vmem:[%s3850_s6 + $0x20] ss:$8 sps:$4 sm:$0xff]  }
 0x151   :  { %2632 = vmatpush3.bf16.msra.mxu0 %v2746_v23  ;;  %v2759_v52 = vld [vmem:[%s3850_s6 + $0x34] ss:$8 sps:$4 sm:$0xff]   ;;  %v2757_v53 = vld [vmem:[%s3850_s6 + $0x30] ss:$8 sps:$4 sm:$0xff]   ;;  %v2760_v54 = vld [vmem:[%s3850_s6 + $0x40] ss:$8 sps:$4 sm:$0xff]  }
 0x152   :  { %2633 = vmatprep.subr.bf16.mxu0 %v3432_v0  ;;  %v2762_v55 = vld [vmem:[%s3850_s6 + $0x44] ss:$8 sps:$4 sm:$0xff]   ;;  %v2765_v56 = vld [vmem:[%s3850_s6 + $0x54] ss:$8 sps:$4 sm:$0xff]   ;;  %v2763_v58 = vld [vmem:[%s3850_s6 + $0x50] ss:$8 sps:$4 sm:$0xff]  }
 0x153   :  { %v2768_v59 = vld [vmem:[%s3850_s6 + $0x64] ss:$8 sps:$4 sm:$0xff]   ;;  %v2766_v60 = vld [vmem:[%s3850_s6 + $0x60] ss:$8 sps:$4 sm:$0xff]   ;;  %v2771_v61 = vld [vmem:[%s3850_s6 + $0x74] ss:$8 sps:$4 sm:$0xff]  }
 0x154   :  { %v2769_v62 = vld [vmem:[%s3850_s6 + $0x70] ss:$8 sps:$4 sm:$0xff]   ;;  %s3859_s30 = sld [smem:[#allocation45_spill]]  ;;  %s3860_s15 = sld [smem:[#allocation46_spill]] }
 0x155   :  { %2634 = vmatpush3.bf16.msra.mxu0 %v2747_v24  ;;  %s3861_s0 = sld [smem:[#allocation48_spill]]  ;;  %s3862_s16 = sld [smem:[#allocation51_spill]] }
 0x156   :  { %635 = vmatprep.subr.bf16.mxu0 %v2750_v43  ;;  %v2801_v43 = vld [vmem:[#allocation22 + $0x8c] ss:$16 sps:$4 sm:$0xff]   ;;  %s3863_s18 = sld [smem:[#allocation49_spill]]  ;;  %s3864_s29 = sld [smem:[#allocation50_spill]] }
 0x157   :  { %s3436_s25 = smov [#allocation26]  }
 0x158   :  { %s2330_s4 = sshll.u32 %s3436_s25, 4  ;;  %s2331_s4 = int_to_ptr.vmem [resolvable:$true] %s2330_s4 }
 0x159   :  { %p3343_p9 = scmp.lt.s32.totalorder %s2331_s4, %s2331_s4 }
 0x221   :  { %v376_v9 = vpop.f32.mrb[0].mxu1 }
 0x222   :  { %v377_v10 = vadd.f32 %v2379_v8, %v376_v9  ;;  %v2625_v11 = vpop.f32.mrb[1].mxu1 }
 0x223   :  { %v379_v12 = vpop.f32.mrb[2].mxu1 }
 0x224   :  { %v382_v13 = vmax.f32 %v377_v10, 0.0  ;;  %v2626_v14 = vpop.f32.mrb[3].mxu1  ;;  %v545_v10 = vlaneseq }
 0x226   :  { %v386_v15 = vsel %vm385_vm4, %v382_v13, 0.0  ;;  %v3706_v11 = vshrl.u32 %v545_v10, 7  ;;  %v2834_v10 = vld [vmem:[#allocation22 + $0x144] ss:$16 sps:$4 sm:$0xff]  }
 0x227   :  { %387 = vadd.xlane.f32.xlu0 %v386_v15 }
 0x228   :  { %v3709_v12 = vsub.s32 0, %v3706_v11  ;;  %v3712_v14 = vsub.s32 1, %v3706_v11 }
 0x2b4   :  { %v388_v16 = vpop.xlane.xlu0 %387 }
 0x2b5   :  { %v390_v17 = vmul.f32 0.015625, %v388_v16 }
 0x2b7   :  { %v391_v18 = vsub.f32 %v382_v13, %v390_v17  ;;  %v542_v13 = vld [vmem:[#allocation17] sm:$0x3] }
 0x2b8   :  { %v548_v15 = vrot.slane %v542_v13, %v3709_v12  ;;  %v552_v16 = vrot.slane %v542_v13, %v3712_v14  ;;  %v2837_v13 = vld [vmem:[#allocation22 + $0x14c] ss:$16 sps:$4 sm:$0xff]  }
 0x2b9   :  { %v392_v19 = vmul.f32 %v391_v18, %v391_v18 }
 0x2bb   :  { %v393_v20 = vsel %vm385_vm4, %v392_v19, 0.0 }
 0x2bc   :  { %394 = vadd.xlane.f32.xlu0 %v393_v20 }
 0x349   :  { %v395_v25 = vpop.xlane.xlu0 %394 }
 0x34a   :  { %v396_v26 = vmul.f32 0.015625, %v395_v25 }
 0x34c   :  { %v397_v27 = vadd.f32 1e-05, %v396_v26  ;;  %v2772_v26 = vld [vmem:[#allocation22] ss:$16 sps:$4 sm:$0xff]  }
 0x34e   :  { %2994 = vrsqrt.f32 %v397_v27  ;;  %v2774_v27 = vld [vmem:[#allocation22 + $0x4] ss:$16 sps:$4 sm:$0xff]  }
 0x34f   :  { %1131 = vmatprep.subr.bf16.mxu1 %v2774_v27  ;;  %v2850_v27 = vld [vmem:[#allocation22 + $0x1a0] ss:$16 sps:$4 sm:$0xff]  }
 0x350   :  { %1132 = vmatpush1.bf16.msra.mxu1 %v2772_v26  ;;  %v2855_v26 = vld [vmem:[#allocation22 + $0x1ac] ss:$16 sps:$4 sm:$0xff]  }
 0x358   :  { %v2995_v28 = vpop.eup %2994 }
 0x359   :  { %v399_v30 = vmul.f32 %v2995_v28, %v391_v18  ;;  %v2775_v28 = vld [vmem:[#allocation22 + $0x8] ss:$16 sps:$4 sm:$0xff]  }
 0x35b   :  { %v406_v32 = vmul.f32 %v2381_v29, %v399_v30  ;;  %v2777_v29 = vld [vmem:[#allocation22 + $0xc] ss:$16 sps:$4 sm:$0xff]   ;;  %v2780_v30 = vld [vmem:[#allocation22 + $0x24] ss:$16 sps:$4 sm:$0xff]  }
 0x35c   :  { %1133 = vmatprep.subr.bf16.mxu1 %v2780_v30  ;;  %v2861_v30 = vld [vmem:[#allocation22 + $0x1cc] ss:$16 sps:$4 sm:$0xff]  }
 0x35d   :  { %v413_v33 = vadd.f32 %v2382_v31, %v406_v32  ;;  %v2783_v31 = vld [vmem:[#allocation22 + $0x2c] ss:$16 sps:$4 sm:$0xff]   ;;  %v2778_v32 = vld [vmem:[#allocation22 + $0x20] ss:$16 sps:$4 sm:$0xff]  }
 0x35e   :  { %1134 = vmatpush1.bf16.msra.mxu1 %v2778_v32  ;;  %v2859_v32 = vld [vmem:[#allocation22 + $0x1c8] ss:$16 sps:$4 sm:$0xff]  }
 0x35f   :  { %v423_v34 = vpack.c.bf16 %v413_v33, %v413_v33  ;;  %v2781_v33 = vld [vmem:[#allocation22 + $0x28] ss:$16 sps:$4 sm:$0xff]  }
 0x361   :  { %2636 = vmatmul.mubr.msk.bf16.vlgmr.msra.gmra.mrb[0].mxu0 %vm385_vm4, %v423_v34  ;;  %v2786_v34 = vld [vmem:[#allocation22 + $0x44] ss:$16 sps:$4 sm:$0xff]  }
 0x362   :  { %636 = vmatpush1.bf16.msra.mxu0 %v2748_v42  ;;  %667 = vmatprep.mubr.bf16.mxu0 %v3435_v57  ;;  %v2798_v42 = vld [vmem:[#allocation22 + $0x84] ss:$16 sps:$4 sm:$0xff]   ;;  %v2817_v57 = vld [vmem:[#allocation22 + $0xe8] ss:$16 sps:$4 sm:$0xff]  }
 0x363   :  { %637 = vmatprep.subr.bf16.mxu0 %v2753_v44  ;;  %1135 = vmatprep.subr.bf16.mxu1 %v2786_v34  ;;  %v2796_v44 = vld [vmem:[#allocation22 + $0x80] ss:$16 sps:$4 sm:$0xff]   ;;  %v2867_v34 = vld [vmem:[#allocation22 + $0x1ec] ss:$16 sps:$4 sm:$0xff]  }
 0x366   :  { %638 = vmatpush1.bf16.msra.mxu0 %v2751_v45  ;;  %v2799_v45 = vld [vmem:[#allocation22 + $0x88] ss:$16 sps:$4 sm:$0xff]  }
 0x367   :  { %639 = vmatprep.subr.bf16.mxu0 %v2756_v46  ;;  %v2804_v46 = vld [vmem:[#allocation22 + $0xa4] ss:$16 sps:$4 sm:$0xff]  }
 0x36a   :  { %640 = vmatpush1.bf16.msra.mxu0 %v2754_v47  ;;  %v2807_v47 = vld [vmem:[#allocation22 + $0xac] ss:$16 sps:$4 sm:$0xff]  }
 0x36b   :  { %641 = vmatprep.subr.bf16.mxu0 %v2759_v52  ;;  %v2808_v52 = vld [vmem:[#allocation22 + $0xc0] ss:$16 sps:$4 sm:$0xff]  }
 0x36e   :  { %642 = vmatpush1.bf16.msra.mxu0 %v2757_v53  ;;  %v2811_v53 = vld [vmem:[#allocation22 + $0xc8] ss:$16 sps:$4 sm:$0xff]  }
 0x36f   :  { %643 = vmatprep.subr.bf16.mxu0 %v2762_v55  ;;  %v2819_v55 = vld [vmem:[#allocation22 + $0xec] ss:$16 sps:$4 sm:$0xff]  }
 0x372   :  { %644 = vmatpush1.bf16.msra.mxu0 %v2760_v54  ;;  %v2816_v54 = vld [vmem:[#allocation22 + $0xe4] ss:$16 sps:$4 sm:$0xff]  }
 0x373   :  { %645 = vmatprep.subr.bf16.mxu0 %v2765_v56  ;;  %v2814_v56 = vld [vmem:[#allocation22 + $0xe0] ss:$16 sps:$4 sm:$0xff]  }
 0x376   :  { %646 = vmatpush1.bf16.msra.mxu0 %v2763_v58  ;;  %v2822_v58 = vld [vmem:[#allocation22 + $0x104] ss:$16 sps:$4 sm:$0xff]  }
 0x377   :  { %647 = vmatprep.subr.bf16.mxu0 %v2768_v59  ;;  %v2825_v59 = vld [vmem:[#allocation22 + $0x10c] ss:$16 sps:$4 sm:$0xff]  }
 0x37a   :  { %648 = vmatpush1.bf16.msra.mxu0 %v2766_v60  ;;  %v2820_v60 = vld [vmem:[#allocation22 + $0x100] ss:$16 sps:$4 sm:$0xff]  }
 0x37b   :  { %649 = vmatprep.subr.bf16.mxu0 %v2771_v61  ;;  %v2823_v61 = vld [vmem:[#allocation22 + $0x108] ss:$16 sps:$4 sm:$0xff]  }
 0x37e   :  { %650 = vmatpush1.bf16.msra.mxu0 %v2769_v62  ;;  %v2828_v62 = vld [vmem:[#allocation22 + $0x124] ss:$16 sps:$4 sm:$0xff]  }
 0x37f   :  { %1172 = vmatprep.subr.bf16.mxu0 %v2777_v29  ;;  %v2858_v29 = vld [vmem:[#allocation22 + $0x1c4] ss:$16 sps:$4 sm:$0xff]  }
 0x434   :  { %v491_v36 = vpop.f32.mrb[0].mxu0 }
 0x435   :  { %v492_v37 = vadd.f32 %v2383_v35, %v491_v36  ;;  %v2637_v38 = vpop.f32.mrb[1].mxu0  ;;  %v2789_v35 = vld [vmem:[#allocation22 + $0x4c] ss:$16 sps:$4 sm:$0xff]   ;;  %v2784_v36 = vld [vmem:[#allocation22 + $0x40] ss:$16 sps:$4 sm:$0xff]  }
 0x436   :  { %v494_v39 = vpop.f32.mrb[2].mxu0  ;;  %v2792_v38 = vld [vmem:[#allocation22 + $0x64] ss:$16 sps:$4 sm:$0xff]   ;;  %1136 = vmatpush1.bf16.msra.mxu1 %v2784_v36  ;;  %v2865_v36 = vld [vmem:[#allocation22 + $0x1e8] ss:$16 sps:$4 sm:$0xff]  }
 0x437   :  { %v497_v40 = vmax.f32 %v492_v37, 0.0  ;;  %v2638_v41 = vpop.f32.mrb[3].mxu0  ;;  %v2787_v37 = vld [vmem:[#allocation22 + $0x48] ss:$16 sps:$4 sm:$0xff]   ;;  %v2795_v39 = vld [vmem:[#allocation22 + $0x6c] ss:$16 sps:$4 sm:$0xff]   ;;  %1137 = vmatprep.subr.bf16.mxu1 %v2792_v38 }
 0x438   :  { %v2793_v41 = vld [vmem:[#allocation22 + $0x68] ss:$16 sps:$4 sm:$0xff]  }
 0x439   :  { %500 = vadd.xlane.f32.xlu1 %v497_v40 }
 0x4c6   :  { %v501_v48 = vpop.xlane.xlu1 %500 }
 0x4c7   :  { %v503_v49 = vmul.f32 0.0078125, %v501_v48  ;;  %v2802_v48 = vld [vmem:[#allocation22 + $0xa0] ss:$16 sps:$4 sm:$0xff]  }
 0x4c9   :  { %v504_v50 = vsub.f32 %v497_v40, %v503_v49  ;;  %v2790_v40 = vld [vmem:[#allocation22 + $0x60] ss:$16 sps:$4 sm:$0xff]   ;;  %v2805_v49 = vld [vmem:[#allocation22 + $0xa8] ss:$16 sps:$4 sm:$0xff]  }
 0x4ca   :  { %1138 = vmatpush1.bf16.msra.mxu1 %v2790_v40  ;;  %v678_v40 = vld [vmem:[#allocation19] sm:$0x3] }
 0x4cb   :  { %v505_v51 = vmul.f32 %v504_v50, %v504_v50  ;;  %1139 = vmatprep.subr.bf16.mxu1 %v2798_v42  ;;  %v701_v42 = vrot.slane %v678_v40, %v3709_v12 }
 0x4cd   :  { %506 = vadd.xlane.f32.xlu1 %v505_v51  ;;  %v2813_v51 = vld [vmem:[#allocation22 + $0xcc] ss:$16 sps:$4 sm:$0xff]  }
 0x4ce   :  { %1140 = vmatpush1.bf16.msra.mxu1 %v2796_v44 }
 0x4cf   :  { %1141 = vmatprep.subr.bf16.mxu1 %v2804_v46 }
 0x4d2   :  { %1142 = vmatpush1.bf16.msra.mxu1 %v2802_v48 }
 0x55a   :  { %v507_v63 = vpop.xlane.xlu1 %506 }
 0x55b   :  { %v508_v1 = vmul.f32 0.0078125, %v507_v63  ;;  %v2831_v63 = vld [vmem:[#allocation22 + $0x12c] ss:$16 sps:$4 sm:$0xff]  }
 0x55d   :  { %v509_v2 = vadd.f32 1e-05, %v508_v1  ;;  %v2826_v1 = vld [vmem:[#allocation22 + $0x120] ss:$16 sps:$4 sm:$0xff]  }
 0x55f   :  { %2996 = vrsqrt.f32 %v509_v2  ;;  %v2829_v2 = vld [vmem:[#allocation22 + $0x128] ss:$16 sps:$4 sm:$0xff]  }
 0x569   :  { %v2997_v3 = vpop.eup %2996 }
 0x56a   :  { %v511_v5 = vmul.f32 %v2997_v3, %v504_v50  ;;  %v2810_v50 = vld [vmem:[#allocation22 + $0xc4] ss:$16 sps:$4 sm:$0xff]  }
 0x56b   :  { %1143 = vmatprep.subr.bf16.mxu1 %v2810_v50 }
 0x56c   :  { %v518_v7 = vmul.f32 %v2389_v4, %v511_v5  ;;  %1144 = vmatpush1.bf16.msra.mxu1 %v2808_v52 }
 0x56d   :  { %1145 = vmatprep.subr.bf16.mxu1 %v2816_v54 }
 0x56e   :  { %v525_v8 = vadd.f32 %v2390_v6, %v518_v7 }
 0x570   :  { %v543_v9 = vpack.c.bf16 %v525_v8, %v525_v8  ;;  %1146 = vmatpush1.bf16.msra.mxu1 %v2814_v56  ;;  %v3741_v56 = vsub.s32 2, %v3706_v11 }
 0x571   :  { %1147 = vmatprep.subr.bf16.mxu1 %v2822_v58 }
 0x572   :  { %668 = vmatmul.mubr.bf16.vlgmr.msra.gmra.mrb[4].mxu0 %v543_v9 }
 0x573   :  { %1173 = vmatpush1.bf16.msra.mxu0 %v2775_v28  ;;  %v2853_v28 = vld [vmem:[#allocation22 + $0x1a8] ss:$16 sps:$4 sm:$0xff]  }
 0x574   :  { %1174 = vmatprep.subr.bf16.mxu0 %v2783_v31  ;;  %1148 = vmatpush1.bf16.msra.mxu1 %v2820_v60  ;;  %v2856_v31 = vld [vmem:[#allocation22 + $0x1c0] ss:$16 sps:$4 sm:$0xff]  }
 0x575   :  { %1149 = vmatprep.subr.bf16.mxu1 %v2828_v62 }
 0x577   :  { %1175 = vmatpush1.bf16.msra.mxu0 %v2781_v33  ;;  %v2864_v33 = vld [vmem:[#allocation22 + $0x1e4] ss:$16 sps:$4 sm:$0xff]  }
 0x578   :  { %1176 = vmatprep.subr.bf16.mxu0 %v2789_v35  ;;  %1150 = vmatpush1.bf16.msra.mxu1 %v2826_v1  ;;  %v2862_v35 = vld [vmem:[#allocation22 + $0x1e0] ss:$16 sps:$4 sm:$0xff]  }
 0x579   :  { %1151 = vmatprep.subr.bf16.mxu1 %v2834_v10 }
 0x57b   :  { %1177 = vmatpush1.bf16.msra.mxu0 %v2787_v37 }
 0x57c   :  { %1178 = vmatprep.subr.bf16.mxu0 %v2795_v39 }
 0x57f   :  { %1179 = vmatpush1.bf16.msra.mxu0 %v2793_v41  ;;  %v679_v41 = vld [vmem:[#allocation20] sm:$0x3] }
 0x580   :  { %1180 = vmatprep.subr.bf16.mxu0 %v2801_v43  ;;  %v705_v43 = vrot.slane %v678_v40, %v3712_v14  ;;  %v714_v46 = vrot.slane %v679_v41, %v3709_v12  ;;  %v2900_v40 = vld [vmem:[#allocation23 + $0xa4] ss:$8 sps:$4 sm:$0xff]  }
 0x583   :  { %1181 = vmatpush1.bf16.msra.mxu0 %v2799_v45 }
 0x584   :  { %1182 = vmatprep.subr.bf16.mxu0 %v2807_v47  ;;  %v718_v47 = vrot.slane %v679_v41, %v3712_v14  ;;  %v2898_v41 = vld [vmem:[#allocation23 + $0xa0] ss:$8 sps:$4 sm:$0xff]  }
 0x587   :  { %1183 = vmatpush1.bf16.msra.mxu0 %v2805_v49 }
 0x588   :  { %1184 = vmatprep.subr.bf16.mxu0 %v2813_v51 }
 0x58b   :  { %1185 = vmatpush1.bf16.msra.mxu0 %v2811_v53 }
 0x58c   :  { %1186 = vmatprep.subr.bf16.mxu0 %v2819_v55  ;;  %v787_v55 = vld [vmem:[%s3851_s2] sm:$0xf] }
 0x58d   :  { %v794_v58 = vrot.slane %v787_v55, %v3709_v12  ;;  %v798_v60 = vrot.slane %v787_v55, %v3712_v14 }
 0x58f   :  { %1187 = vmatpush1.bf16.msra.mxu0 %v2817_v57  ;;  %v3744_v57 = vsub.s32 3, %v3706_v11 }
 0x590   :  { %1188 = vmatprep.subr.bf16.mxu0 %v2825_v59  ;;  %v802_v59 = vrot.slane %v787_v55, %v3741_v56 }
 0x593   :  { %1189 = vmatpush1.bf16.msra.mxu0 %v2823_v61 }
 0x594   :  { %1190 = vmatprep.subr.bf16.mxu0 %v2831_v63  ;;  %v806_v63 = vrot.slane %v787_v55, %v3744_v57  ;;  %v2903_v55 = vld [vmem:[#allocation23 + $0xb4] ss:$8 sps:$4 sm:$0xff]  }
 0x597   :  { %1191 = vmatpush1.bf16.msra.mxu0 %v2829_v2 }
 0x598   :  { %1192 = vmatprep.subr.bf16.mxu0 %v2837_v13 }
 0x645   :  { %v669_v17 = vpop.f32.mrb[4].mxu0 }
 0x646   :  { %v3716_v18 = vadd.f32 %v669_v17, %v548_v15  ;;  %v671_v19 = vpop.f32.mrb[5].mxu0  ;;  %v2832_v15 = vld [vmem:[#allocation22 + $0x140] ss:$16 sps:$4 sm:$0xff]   ;;  %v2840_v17 = vld [vmem:[#allocation22 + $0x164] ss:$16 sps:$4 sm:$0xff]  }
 0x647   :  { %v3718_v20 = vadd.f32 %v671_v19, %v552_v16  ;;  %v673_v21 = vpop.f32.mrb[6].mxu0  ;;  %v2835_v16 = vld [vmem:[#allocation22 + $0x148] ss:$16 sps:$4 sm:$0xff]   ;;  %1152 = vmatpush1.bf16.msra.mxu1 %v2832_v15  ;;  %v2838_v19 = vld [vmem:[#allocation22 + $0x160] ss:$16 sps:$4 sm:$0xff]  }
 0x648   :  { %v676_v22 = vmax.f32 %v3716_v18, 0.0  ;;  %v674_v23 = vpop.f32.mrb[7].mxu0  ;;  %1193 = vmatpush1.bf16.msra.mxu0 %v2835_v16  ;;  %v2843_v18 = vld [vmem:[#allocation22 + $0x16c] ss:$16 sps:$4 sm:$0xff]   ;;  %v2841_v21 = vld [vmem:[#allocation22 + $0x168] ss:$16 sps:$4 sm:$0xff]   ;;  %1153 = vmatprep.subr.bf16.mxu1 %v2840_v17 }
 0x649   :  { %v677_v24 = vmax.f32 %v3718_v20, 0.0  ;;  %1194 = vmatprep.subr.bf16.mxu0 %v2843_v18  ;;  %v2846_v20 = vld [vmem:[#allocation22 + $0x184] ss:$16 sps:$4 sm:$0xff]   ;;  %v2847_v23 = vld [vmem:[#allocation22 + $0x188] ss:$16 sps:$4 sm:$0xff]  }
 0x64b   :  { %v680_v25 = vadd.f32 %v677_v24, %v676_v22  ;;  %1154 = vmatpush1.bf16.msra.mxu1 %v2838_v19 }
 0x64c   :  { %1195 = vmatpush1.bf16.msra.mxu0 %v2841_v21  ;;  %1155 = vmatprep.subr.bf16.mxu1 %v2846_v20  ;;  %v2868_v21 = vld [vmem:[#allocation23] ss:$8 sps:$4 sm:$0xff]   ;;  %v2870_v20 = vld [vmem:[#allocation23 + $0x4] ss:$8 sps:$4 sm:$0xff]  }
 0x64d   :  { %681 = vadd.xlane.f32.xlu0 %v680_v25  ;;  %v2852_v25 = vld [vmem:[#allocation22 + $0x1a4] ss:$16 sps:$4 sm:$0xff]  }
 0x6da   :  { %v682_v3 = vpop.xlane.xlu0 %681 }
 0x6db   :  { %v684_v4 = vmul.f32 0.00390625, %v682_v3 }
 0x6dd   :  { %v3728_v5 = vsub.f32 %v676_v22, %v684_v4  ;;  %v686_v6 = vsub.f32 %v677_v24, %v684_v4  ;;  %v2844_v22 = vld [vmem:[#allocation22 + $0x180] ss:$16 sps:$4 sm:$0xff]   ;;  %v2849_v24 = vld [vmem:[#allocation22 + $0x18c] ss:$16 sps:$4 sm:$0xff]  }
 0x6de   :  { %1196 = vmatprep.subr.bf16.mxu0 %v2849_v24  ;;  %1156 = vmatpush1.bf16.msra.mxu1 %v2844_v22  ;;  %v2873_v22 = vld [vmem:[#allocation23 + $0x14] ss:$8 sps:$4 sm:$0xff]   ;;  %v2876_v24 = vld [vmem:[#allocation23 + $0x24] ss:$8 sps:$4 sm:$0xff]  }
 0x6df   :  { %v687_v7 = vmul.f32 %v3728_v5, %v3728_v5  ;;  %v688_v8 = vmul.f32 %v686_v6, %v686_v6  ;;  %1197 = vmatpush1.bf16.msra.mxu0 %v2847_v23  ;;  %1157 = vmatprep.subr.bf16.mxu1 %v2852_v25  ;;  %v2871_v23 = vld [vmem:[#allocation23 + $0x10] ss:$8 sps:$4 sm:$0xff]   ;;  %v2874_v25 = vld [vmem:[#allocation23 + $0x20] ss:$8 sps:$4 sm:$0xff]  }
 0x6e0   :  { %1198 = vmatprep.subr.bf16.mxu0 %v2855_v26  ;;  %v2879_v26 = vld [vmem:[#allocation23 + $0x34] ss:$8 sps:$4 sm:$0xff]  }
 0x6e1   :  { %v689_v9 = vadd.f32 %v688_v8, %v687_v7 }
 0x6e2   :  { %1158 = vmatpush1.bf16.msra.mxu1 %v2850_v27  ;;  %v2877_v27 = vld [vmem:[#allocation23 + $0x30] ss:$8 sps:$4 sm:$0xff]  }
 0x6e3   :  { %690 = vadd.xlane.f32.xlu1 %v689_v9  ;;  %1199 = vmatpush1.bf16.msra.mxu0 %v2853_v28  ;;  %v2882_v28 = vld [vmem:[#allocation23 + $0x44] ss:$8 sps:$4 sm:$0xff]  }
 0x6e4   :  { %1159 = vmatprep.subr.bf16.mxu1 %v2858_v29  ;;  %1200 = vmatprep.subr.bf16.mxu0 %v2861_v30  ;;  %v2880_v29 = vld [vmem:[#allocation23 + $0x40] ss:$8 sps:$4 sm:$0xff]   ;;  %v2885_v30 = vld [vmem:[#allocation23 + $0x54] ss:$8 sps:$4 sm:$0xff]  }
 0x6e6   :  { %1160 = vmatpush1.bf16.msra.mxu1 %v2856_v31  ;;  %v2883_v31 = vld [vmem:[#allocation23 + $0x50] ss:$8 sps:$4 sm:$0xff]  }
 0x6e7   :  { %1201 = vmatpush1.bf16.msra.mxu0 %v2859_v32  ;;  %1161 = vmatprep.subr.bf16.mxu1 %v2864_v33  ;;  %v2888_v32 = vld [vmem:[#allocation23 + $0x64] ss:$8 sps:$4 sm:$0xff]   ;;  %v2886_v33 = vld [vmem:[#allocation23 + $0x60] ss:$8 sps:$4 sm:$0xff]  }
 0x6e8   :  { %1202 = vmatprep.subr.bf16.mxu0 %v2867_v34  ;;  %v2891_v34 = vld [vmem:[#allocation23 + $0x74] ss:$8 sps:$4 sm:$0xff]  }
 0x6ea   :  { %1162 = vmatpush1.bf16.msra.mxu1 %v2862_v35  ;;  %v2889_v35 = vld [vmem:[#allocation23 + $0x70] ss:$8 sps:$4 sm:$0xff]  }
 0x6eb   :  { %1203 = vmatpush1.bf16.msra.mxu0 %v2865_v36  ;;  %1696 = vmatprep.subr.bf16.mxu1 %v2870_v20  ;;  %v2894_v36 = vld [vmem:[#allocation23 + $0x84] ss:$8 sps:$4 sm:$0xff]  }
 0x770   :  { %v691_v37 = vpop.xlane.xlu1 %690 }
 0x771   :  { %v692_v38 = vmul.f32 0.00390625, %v691_v37  ;;  %v2892_v37 = vld [vmem:[#allocation23 + $0x80] ss:$8 sps:$4 sm:$0xff]  }
 0x773   :  { %v693_v39 = vadd.f32 1e-05, %v692_v38  ;;  %v2897_v38 = vld [vmem:[#allocation23 + $0x94] ss:$8 sps:$4 sm:$0xff]  }
 0x775   :  { %2998 = vrsqrt.f32 %v693_v39  ;;  %v2895_v39 = vld [vmem:[#allocation23 + $0x90] ss:$8 sps:$4 sm:$0xff]  }
 0x77f   :  { %v2999_v44 = vpop.eup %2998 }
 0x780   :  { %v696_v45 = vmul.f32 %v2999_v44, %v686_v6  ;;  %v695_v48 = vmul.f32 %v2999_v44, %v3728_v5 }
 0x782   :  { %v709_v49 = vmul.f32 %v705_v43, %v696_v45  ;;  %v708_v50 = vmul.f32 %v701_v42, %v695_v48 }
 0x784   :  { %v722_v51 = vadd.f32 %v718_v47, %v709_v49  ;;  %v721_v52 = vadd.f32 %v714_v46, %v708_v50 }
 0x786   :  { %v789_v53 = vpack.c.bf16 %v722_v51, %v722_v51  ;;  %v788_v54 = vpack.c.bf16 %v721_v52, %v721_v52 }
 0x788   :  { %1163 = vmatprep.mubr.bf16.mxu1 %v789_v53  ;;  %1204 = vmatprep.mubr.bf16.mxu0 %v789_v53 }
 0x789   :  { %1164 = vmatmul.mubr.bf16.vlgmr.msra.gmra.mrb[4].mxu1 %v788_v54  ;;  %1205 = vmatmul.mubr.bf16.vlgmr.msra.gmra.mrb[8].mxu0 %v788_v54 }
 0x78a   :  { %1697 = vmatpush1.bf16.msra.mxu1 %v2868_v21 }
 0x78b   :  { %1698 = vmatprep.subr.bf16.mxu1 %v2873_v22 }
 0x78e   :  { %1699 = vmatpush1.bf16.msra.mxu1 %v2871_v23 }
 0x78f   :  { %1700 = vmatprep.subr.bf16.mxu1 %v2876_v24 }
 0x792   :  { %1701 = vmatpush1.bf16.msra.mxu1 %v2874_v25 }
 0x793   :  { %1702 = vmatprep.subr.bf16.mxu1 %v2879_v26 }
 0x796   :  { %1703 = vmatpush1.bf16.msra.mxu1 %v2877_v27 }
 0x797   :  { %1704 = vmatprep.subr.bf16.mxu1 %v2882_v28 }
 0x79a   :  { %1705 = vmatpush1.bf16.msra.mxu1 %v2880_v29 }
 0x79b   :  { %1706 = vmatprep.subr.bf16.mxu1 %v2885_v30 }
 0x79e   :  { %1707 = vmatpush1.bf16.msra.mxu1 %v2883_v31 }
 0x79f   :  { %1708 = vmatprep.subr.bf16.mxu1 %v2888_v32 }
 0x7a2   :  { %1709 = vmatpush1.bf16.msra.mxu1 %v2886_v33 }
 0x7a3   :  { %1710 = vmatprep.subr.bf16.mxu1 %v2891_v34  ;;  %v2916_v34 = vld [vmem:[#allocation23 + $0x100] ss:$8 sps:$4 sm:$0xff]  }
 0x7a6   :  { %1711 = vmatpush1.bf16.msra.mxu1 %v2889_v35 }
 0x7a7   :  { %1712 = vmatprep.subr.bf16.mxu1 %v2894_v36  ;;  %v2921_v36 = vld [vmem:[#allocation23 + $0x114] ss:$8 sps:$4 sm:$0xff]  }
 0x7aa   :  { %1713 = vmatpush1.bf16.msra.mxu1 %v2892_v37  ;;  %v2924_v37 = vld [vmem:[#allocation23 + $0x124] ss:$8 sps:$4 sm:$0xff]  }
 0x7ab   :  { %1714 = vmatprep.subr.bf16.mxu1 %v2897_v38  ;;  %v2922_v38 = vld [vmem:[#allocation23 + $0x120] ss:$8 sps:$4 sm:$0xff]  }
 0x7ae   :  { %1715 = vmatpush1.bf16.msra.mxu1 %v2895_v39  ;;  %v2927_v39 = vld [vmem:[#allocation23 + $0x134] ss:$8 sps:$4 sm:$0xff]  }
 0x7af   :  { %1716 = vmatprep.subr.bf16.mxu1 %v2900_v40  ;;  %v2925_v40 = vld [vmem:[#allocation23 + $0x130] ss:$8 sps:$4 sm:$0xff]  }
 0x7b2   :  { %1717 = vmatpush1.bf16.msra.mxu1 %v2898_v41  ;;  %v2930_v41 = vld [vmem:[#allocation23 + $0x144] ss:$8 sps:$4 sm:$0xff]  }
 0x7b3   :  { %1718 = vmatprep.subr.bf16.mxu1 %v2903_v55  ;;  %v2951_v55 = vld [vmem:[#allocation23 + $0x1b4] ss:$8 sps:$4 sm:$0xff]  }
 0x85c   :  { %v1165_v61 = vpop.f32.mrb[4].mxu1  ;;  %v1206_v62 = vpop.f32.mrb[8].mxu0 }
 0x85d   :  { %v3750_v1 = vadd.f32 %v1165_v61, %v794_v58  ;;  %v1167_v2 = vpop.f32.mrb[5].mxu1  ;;  %v1208_v3 = vpop.f32.mrb[9].mxu0  ;;  %v3752_v4 = vadd.f32 %v1206_v62, %v802_v59  ;;  %v2901_v58 = vld [vmem:[#allocation23 + $0xb0] ss:$8 sps:$4 sm:$0xff]   ;;  %v2904_v59 = vld [vmem:[#allocation23 + $0xc0] ss:$8 sps:$4 sm:$0xff]  }
 0x85e   :  { %v1168_v5 = vadd.f32 %v1167_v2, %v798_v60  ;;  %v1169_v6 = vpop.f32.mrb[6].mxu1  ;;  %v1210_v11 = vpop.f32.mrb[10].mxu0  ;;  %v1209_v13 = vadd.f32 %v1208_v3, %v806_v63  ;;  %1719 = vmatpush1.bf16.msra.mxu1 %v2901_v58  ;;  %v2906_v60 = vld [vmem:[#allocation23 + $0xc4] ss:$8 sps:$4 sm:$0xff]   ;;  %v2909_v61 = vld [vmem:[#allocation23 + $0xd4] ss:$8 sps:$4 sm:$0xff]  }
 0x85f   :  { %v1213_v7 = vmax.f32 %v3750_v1, 0.0  ;;  %v1170_v8 = vpop.f32.mrb[7].mxu1  ;;  %v1211_v9 = vpop.f32.mrb[11].mxu0  ;;  %v1215_v15 = vmax.f32 %v3752_v4, 0.0  ;;  %1720 = vmatprep.subr.bf16.mxu1 %v2906_v60  ;;  %v2907_v62 = vld [vmem:[#allocation23 + $0xd0] ss:$8 sps:$4 sm:$0xff]  }
 0x860   :  { %v1214_v10 = vmax.f32 %v1168_v5, 0.0  ;;  %v1216_v17 = vmax.f32 %v1209_v13, 0.0  ;;  %v2912_v63 = vld [vmem:[#allocation23 + $0xe4] ss:$8 sps:$4 sm:$0xff]   ;;  %v2910_v1 = vld [vmem:[#allocation23 + $0xe0] ss:$8 sps:$4 sm:$0xff]  }
 0x861   :  { %v2915_v2 = vld [vmem:[#allocation23 + $0xf4] ss:$8 sps:$4 sm:$0xff]   ;;  %v2913_v3 = vld [vmem:[#allocation23 + $0xf0] ss:$8 sps:$4 sm:$0xff]   ;;  %v2918_v4 = vld [vmem:[#allocation23 + $0x104] ss:$8 sps:$4 sm:$0xff]  }
 0x862   :  { %v1219_v16 = vadd.f32 %v1214_v10, %v1213_v7  ;;  %1721 = vmatpush1.bf16.msra.mxu1 %v2904_v59  ;;  %v1218_v8 = vld [vmem:[%s3853_s19] sm:$0xf]  ;;  %v2949_v58 = vld [vmem:[#allocation23 + $0x1b0] ss:$8 sps:$4 sm:$0xff]  }
 0x863   :  { %1722 = vmatprep.subr.bf16.mxu1 %v2909_v61  ;;  %v1283_v21 = vrot.slane %v1218_v8, %v3741_v56  ;;  %v2954_v59 = vld [vmem:[#allocation23 + $0x1c4] ss:$8 sps:$4 sm:$0xff]   ;;  %v2952_v60 = vld [vmem:[#allocation23 + $0x1c0] ss:$8 sps:$4 sm:$0xff]   ;;  %v2957_v61 = vld [vmem:[#allocation23 + $0x1d4] ss:$8 sps:$4 sm:$0xff]  }
 0x864   :  { %v1220_v18 = vadd.f32 %v1219_v16, %v1215_v15 }
 0x866   :  { %v1221_v19 = vadd.f32 %v1220_v18, %v1216_v17  ;;  %1723 = vmatpush1.bf16.msra.mxu1 %v2907_v62  ;;  %v1275_v18 = vrot.slane %v1218_v8, %v3709_v12  ;;  %v2955_v62 = vld [vmem:[#allocation23 + $0x1d0] ss:$8 sps:$4 sm:$0xff]  }
 0x867   :  { %1724 = vmatprep.subr.bf16.mxu1 %v2912_v63  ;;  %v2960_v63 = vld [vmem:[#allocation23 + $0x1e4] ss:$8 sps:$4 sm:$0xff]  }
 0x868   :  { %1222 = vadd.xlane.f32.xlu0 %v1221_v19  ;;  %v1287_v19 = vrot.slane %v1218_v8, %v3744_v57 }
 0x86a   :  { %1725 = vmatpush1.bf16.msra.mxu1 %v2910_v1  ;;  %v2958_v1 = vld [vmem:[#allocation23 + $0x1e0] ss:$8 sps:$4 sm:$0xff]  }
 0x86b   :  { %1726 = vmatprep.subr.bf16.mxu1 %v2915_v2  ;;  %v2963_v2 = vld [vmem:[#allocation23 + $0x1f4] ss:$8 sps:$4 sm:$0xff]  }
 0x86e   :  { %1727 = vmatpush1.bf16.msra.mxu1 %v2913_v3  ;;  %v2961_v3 = vld [vmem:[#allocation23 + $0x1f0] ss:$8 sps:$4 sm:$0xff]  }
 0x86f   :  { %1737 = vmatprep.subr.bf16.mxu1 %v2918_v4 }
 0x8f5   :  { %v1223_v42 = vpop.xlane.xlu0 %1222 }
 0x8f6   :  { %v1225_v43 = vmul.f32 0.001953125, %v1223_v42  ;;  %v2928_v42 = vld [vmem:[#allocation23 + $0x140] ss:$8 sps:$4 sm:$0xff]  }
 0x8f8   :  { %v1226_v44 = vsub.f32 %v1213_v7, %v1225_v43  ;;  %v1227_v45 = vsub.f32 %v1214_v10, %v1225_v43  ;;  %v1228_v46 = vsub.f32 %v1215_v15, %v1225_v43  ;;  %v1229_v47 = vsub.f32 %v1216_v17, %v1225_v43  ;;  %v1217_v7 = vld [vmem:[%s3852_s17] sm:$0xf]  ;;  %v2933_v43 = vld [vmem:[#allocation23 + $0x154] ss:$8 sps:$4 sm:$0xff]  }
 0x8f9   :  { %v1258_v9 = vrot.slane %v1217_v7, %v3741_v56  ;;  %v1254_v10 = vrot.slane %v1217_v7, %v3712_v14  ;;  %v1250_v13 = vrot.slane %v1217_v7, %v3709_v12  ;;  %v1262_v15 = vrot.slane %v1217_v7, %v3744_v57  ;;  %v2919_v56 = vld [vmem:[#allocation23 + $0x110] ss:$8 sps:$4 sm:$0xff]  }
 0x8fa   :  { %v1230_v48 = vmul.f32 %v1226_v44, %v1226_v44  ;;  %v1231_v49 = vmul.f32 %v1227_v45, %v1227_v45  ;;  %v1232_v50 = vmul.f32 %v1228_v46, %v1228_v46  ;;  %v1233_v52 = vmul.f32 %v1229_v47, %v1229_v47 }
 0x8fb   :  { %v1279_v17 = vrot.slane %v1218_v8, %v3712_v14 }
 0x8fc   :  { %v1234_v51 = vadd.f32 %v1231_v49, %v1230_v48  ;;  %v2937_v48 = vld [vmem:[#allocation23 + $0x170] ss:$8 sps:$4 sm:$0xff]   ;;  %v2942_v49 = vld [vmem:[#allocation23 + $0x184] ss:$8 sps:$4 sm:$0xff]  }
 0x8fe   :  { %v1235_v53 = vadd.f32 %v1234_v51, %v1232_v50  ;;  %v2940_v50 = vld [vmem:[#allocation23 + $0x180] ss:$8 sps:$4 sm:$0xff]   ;;  %v2945_v51 = vld [vmem:[#allocation23 + $0x194] ss:$8 sps:$4 sm:$0xff]  }
 0x900   :  { %v1236_v54 = vadd.f32 %v1235_v53, %v1233_v52  ;;  %v2943_v52 = vld [vmem:[#allocation23 + $0x190] ss:$8 sps:$4 sm:$0xff]   ;;  %v2948_v53 = vld [vmem:[#allocation23 + $0x1a4] ss:$8 sps:$4 sm:$0xff]  }
 0x902   :  { %1237 = vadd.xlane.f32.xlu1 %v1236_v54  ;;  %v2946_v54 = vld [vmem:[#allocation23 + $0x1a0] ss:$8 sps:$4 sm:$0xff]  }
 0x98f   :  { %v1238_v5 = vpop.xlane.xlu1 %1237 }
 0x990   :  { %v1239_v6 = vmul.f32 0.001953125, %v1238_v5  ;;  %v1360_v5 = vld [vmem:[%s3854_s13] sm:$0x3] }
 0x992   :  { %v1240_v11 = vadd.f32 1e-05, %v1239_v6  ;;  %v1369_v6 = vrot.slane %v1360_v5, %v3709_v12 }
 0x994   :  { %3000 = vrsqrt.f32 %v1240_v11  ;;  %v1373_v11 = vrot.slane %v1360_v5, %v3712_v14 }
 0x99e   :  { %v3001_v16 = vpop.eup %3000 }
 0x99f   :  { %v1243_v20 = vmul.f32 %v3001_v16, %v1227_v45  ;;  %v1242_v22 = vmul.f32 %v3001_v16, %v1226_v44  ;;  %v1245_v23 = vmul.f32 %v3001_v16, %v1229_v47  ;;  %v1244_v24 = vmul.f32 %v3001_v16, %v1228_v46  ;;  %v2931_v44 = vld [vmem:[#allocation23 + $0x150] ss:$8 sps:$4 sm:$0xff]   ;;  %v2936_v45 = vld [vmem:[#allocation23 + $0x164] ss:$8 sps:$4 sm:$0xff]   ;;  %v2934_v46 = vld [vmem:[#allocation23 + $0x160] ss:$8 sps:$4 sm:$0xff]  }
 0x9a0   :  { %v2939_v47 = vld [vmem:[#allocation23 + $0x174] ss:$8 sps:$4 sm:$0xff]  }
 0x9a1   :  { %v1268_v25 = vmul.f32 %v1254_v10, %v1243_v20  ;;  %v1267_v26 = vmul.f32 %v1250_v13, %v1242_v22  ;;  %v1270_v27 = vmul.f32 %v1262_v15, %v1245_v23  ;;  %v1269_v28 = vmul.f32 %v1258_v9, %v1244_v24  ;;  %v2966_v20 = vld [vmem:[#allocation25 + $0x48] sm:$0xff]  }
 0x9a2   :  { %v2967_v22 = vld [vmem:[#allocation25 + $0x8] sm:$0xff]  }
 0x9a3   :  { %v1293_v29 = vadd.f32 %v1279_v17, %v1268_v25  ;;  %v1292_v30 = vadd.f32 %v1275_v18, %v1267_v26  ;;  %v1295_v31 = vadd.f32 %v1287_v19, %v1270_v27  ;;  %v3766_v32 = vadd.f32 %v1283_v21, %v1269_v28  ;;  %v2964_v19 = vld [vmem:[#allocation25 + $0x40] sm:$0xff]  }
 0x9a4   :  { %v2965_v21 = vld [vmem:[#allocation25] sm:$0xff]   ;;  %2582 = vmatprep.subr.bf16.mxu0 %v2964_v19 }
 0x9a5   :  { %v1362_v33 = vpack.c.bf16 %v1293_v29, %v1293_v29  ;;  %v1361_v35 = vpack.c.bf16 %v1292_v30, %v1292_v30  ;;  %v1364_v57 = vpack.c.bf16 %v1295_v31, %v1295_v31  ;;  %v1363_v4 = vpack.c.bf16 %v3766_v32, %v3766_v32  ;;  %2583 = vmatpush3.bf16.msra.mxu0 %v2965_v21  ;;  %v2968_v30 = vld [vmem:[#allocation25 + $0x50] sm:$0xff]   ;;  %v2970_v32 = vld [vmem:[#allocation25 + $0x58] sm:$0xff]  }
 0x9a6   :  { %2584 = vmatprep.subr.bf16.mxu0 %v2966_v20  ;;  %v2969_v31 = vld [vmem:[#allocation25 + $0x10] sm:$0xff]   ;;  %v2552_v20 = vld [vmem:[%s3859_s30] ss:$0 sm:$0xff] }
 0x9a7   :  { %1728 = vmatprep.mubr.bf16.mxu1 %v1362_v33  ;;  %v2971_v33 = vld [vmem:[#allocation25 + $0x18] sm:$0xff]  }
 0x9a8   :  { %1729 = vmatmul.mubr.bf16.vlgmr.msra.gmra.mrb[8].mxu1 %v1361_v35  ;;  %v2973_v35 = vld [vmem:[#allocation25 + $0x20] sm:$0xff]  }
 0x9a9   :  { %1738 = vmatpush1.bf16.msra.mxu1 %v2916_v34  ;;  %1769 = vmatprep.mubr.bf16.mxu1 %v1364_v57  ;;  %v2972_v34 = vld [vmem:[#allocation25 + $0x60] sm:$0xff]   ;;  %v2975_v57 = vld [vmem:[#allocation25 + $0x28] sm:$0xff]  }
 0x9aa   :  { %1739 = vmatprep.subr.bf16.mxu1 %v2921_v36  ;;  %2585 = vmatpush3.bf16.msra.mxu0 %v2967_v22  ;;  %v2974_v36 = vld [vmem:[#allocation25 + $0x68] sm:$0xff]  }
 0x9ab   :  { %2586 = vmatprep.subr.bf16.mxu0 %v2968_v30 }
 0x9ad   :  { %1740 = vmatpush1.bf16.msra.mxu1 %v2919_v56  ;;  %v2976_v56 = vld [vmem:[#allocation25 + $0x70] sm:$0xff]  }
 0x9ae   :  { %1741 = vmatprep.subr.bf16.mxu1 %v2924_v37  ;;  %2587 = vmatpush3.bf16.msra.mxu0 %v2969_v31  ;;  %v2977_v37 = vld [vmem:[#allocation25 + $0x30] sm:$0xff]  }
 0x9af   :  { %2588 = vmatprep.subr.bf16.mxu0 %v2970_v32 }
 0x9b1   :  { %1742 = vmatpush1.bf16.msra.mxu1 %v2922_v38  ;;  %v2978_v38 = vld [vmem:[#allocation25 + $0x78] sm:$0xff]  }
 0x9b2   :  { %1743 = vmatprep.subr.bf16.mxu1 %v2927_v39  ;;  %2589 = vmatpush3.bf16.msra.mxu0 %v2971_v33  ;;  %v2979_v39 = vld [vmem:[#allocation25 + $0x38] sm:$0xff]  }
 0x9b3   :  { %2590 = vmatprep.subr.bf16.mxu0 %v2972_v34 }
 0x9b5   :  { %1744 = vmatpush1.bf16.msra.mxu1 %v2925_v40 }
 0x9b6   :  { %1745 = vmatprep.subr.bf16.mxu1 %v2930_v41  ;;  %2591 = vmatpush3.bf16.msra.mxu0 %v2973_v35 }
 0x9b7   :  { %2592 = vmatprep.subr.bf16.mxu0 %v2974_v36 }
 0x9b9   :  { %1746 = vmatpush1.bf16.msra.mxu1 %v2928_v42 }
 0x9ba   :  { %1747 = vmatprep.subr.bf16.mxu1 %v2933_v43  ;;  %2593 = vmatpush3.bf16.msra.mxu0 %v2975_v57  ;;  %v1780_v43 = vld [vmem:[%s3855_s7] sm:$0x3] }
 0x9bb   :  { %2594 = vmatprep.subr.bf16.mxu0 %v2976_v56 }
 0x9bd   :  { %1748 = vmatpush1.bf16.msra.mxu1 %v2931_v44  ;;  %v1781_v44 = vld [vmem:[%s3856_s10] sm:$0x3] }
 0x9be   :  { %1749 = vmatprep.subr.bf16.mxu1 %v2936_v45  ;;  %2595 = vmatpush3.bf16.msra.mxu0 %v2977_v37  ;;  %v1802_v45 = vrot.slane %v1780_v43, %v3709_v12 }
 0x9bf   :  { %2596 = vmatprep.subr.bf16.mxu0 %v2978_v38  ;;  %v2988_v38 = vld [vmem:[%s3862_s16] sm:$0xff]  }
 0x9c1   :  { %1750 = vmatpush1.bf16.msra.mxu1 %v2934_v46  ;;  %v1806_v46 = vrot.slane %v1780_v43, %v3712_v14 }
 0x9c2   :  { %1751 = vmatprep.subr.bf16.mxu1 %v2939_v47  ;;  %2597 = vmatpush3.bf16.msra.mxu0 %v2979_v39  ;;  %v2989_v39 = vld [vmem:[%s3862_s16 + $0x8] sm:$0xff]  }
 0x9c3   :  { %2639 = vmatprep.subr.bf16.mxu0 %v3432_v0 }
 0x9c5   :  { %1752 = vmatpush1.bf16.msra.mxu1 %v2937_v48 }
 0x9c6   :  { %1753 = vmatprep.subr.bf16.mxu1 %v2942_v49  ;;  %v1815_v49 = vrot.slane %v1781_v44, %v3709_v12 }
 0x9c9   :  { %1754 = vmatpush1.bf16.msra.mxu1 %v2940_v50  ;;  %v1819_v50 = vrot.slane %v1781_v44, %v3712_v14 }
 0x9ca   :  { %1755 = vmatprep.subr.bf16.mxu1 %v2945_v51 }
 0x9cd   :  { %1756 = vmatpush1.bf16.msra.mxu1 %v2943_v52 }
 0x9ce   :  { %1757 = vmatprep.subr.bf16.mxu1 %v2948_v53 }
 0x9d1   :  { %1758 = vmatpush1.bf16.msra.mxu1 %v2946_v54 }
 0x9d2   :  { %1759 = vmatprep.subr.bf16.mxu1 %v2951_v55 }
 0x9d5   :  { %1760 = vmatpush1.bf16.msra.mxu1 %v2949_v58 }
 0x9d6   :  { %1761 = vmatprep.subr.bf16.mxu1 %v2954_v59 }
 0x9d9   :  { %1762 = vmatpush1.bf16.msra.mxu1 %v2952_v60 }
 0x9da   :  { %1763 = vmatprep.subr.bf16.mxu1 %v2957_v61 }
 0x9dd   :  { %1764 = vmatpush1.bf16.msra.mxu1 %v2955_v62  ;;  %v2535_v62 = vld [vmem:[%s3857_s21] ss:$0 sm:$0xff] }
 0x9de   :  { %1765 = vmatprep.subr.bf16.mxu1 %v2960_v63 }
 0x9e1   :  { %1766 = vmatpush1.bf16.msra.mxu1 %v2958_v1 }
 0x9e2   :  { %1767 = vmatprep.subr.bf16.mxu1 %v2963_v2 }
 0x9e5   :  { %1768 = vmatpush1.bf16.msra.mxu1 %v2961_v3  ;;  %v2980_v3 = vld [vmem:[%s3858_s11] sm:$0xff]  }
 0x9e8   :  { %1770 = vmatmul.mubr.bf16.vlgmr.msra.gmra.mrb[8].mxu1 %v1363_v4  ;;  %v2981_v4 = vld [vmem:[%s3858_s11 + $0x8] sm:$0xff]  }
 0xabb   :  { %v1771_v7 = vpop.f32.mrb[8].mxu1 }
 0xabc   :  { %v2679_v8 = vadd.f32 %v1771_v7, %v1369_v6  ;;  %v1773_v9 = vpop.f32.mrb[9].mxu1 }
 0xabd   :  { %v2680_v10 = vadd.f32 %v1773_v9, %v1373_v11  ;;  %v1775_v13 = vpop.f32.mrb[10].mxu1  ;;  %v2983_v9 = vld [vmem:[%s3858_s11 + $0x18] sm:$0xff]  }
 0xabe   :  { %v1778_v15 = vmax.f32 %v2679_v8, 0.0  ;;  %v1776_v16 = vpop.f32.mrb[11].mxu1  ;;  %v2982_v8 = vld [vmem:[%s3858_s11 + $0x10] sm:$0xff]   ;;  %v2985_v13 = vld [vmem:[%s3858_s11 + $0x28] sm:$0xff]  }
 0xabf   :  { %v1779_v17 = vmax.f32 %v2680_v10, 0.0  ;;  %v2984_v10 = vld [vmem:[%s3858_s11 + $0x20] sm:$0xff]   ;;  %v2987_v16 = vld [vmem:[%s3858_s11 + $0x38] sm:$0xff]  }
 0xac1   :  { %v1782_v18 = vadd.f32 %v1779_v17, %v1778_v15 }
 0xac3   :  { %1783 = vadd.xlane.f32.xlu0 %v1782_v18 }
 0xb50   :  { %v1784_v23 = vpop.xlane.xlu0 %1783 }
 0xb51   :  { %v1785_v24 = vmul.f32 0.00390625, %v1784_v23  ;;  %v2553_v23 = vld [vmem:[%s3860_s15] ss:$0 sm:$0xff] }
 0xb53   :  { %v1786_v25 = vsub.f32 %v1778_v15, %v1785_v24  ;;  %v1787_v26 = vsub.f32 %v1779_v17, %v1785_v24  ;;  %v2986_v15 = vld [vmem:[%s3858_s11 + $0x30] sm:$0xff]  }
 0xb55   :  { %v1788_v27 = vmul.f32 %v1786_v25, %v1786_v25  ;;  %v1789_v28 = vmul.f32 %v1787_v26, %v1787_v26 }
 0xb57   :  { %v1790_v29 = vadd.f32 %v1789_v28, %v1788_v27  ;;  %v2554_v27 = vld [vmem:[%s3861_s0] ss:$0 sm:$0xff] }
 0xb59   :  { %1791 = vadd.xlane.f32.xlu1 %v1790_v29 }
 0xbe6   :  { %v1792_v40 = vpop.xlane.xlu1 %1791 }
 0xbe7   :  { %v1793_v41 = vmul.f32 0.00390625, %v1792_v40  ;;  %v2990_v40 = vld [vmem:[%s3862_s16 + $0x10] sm:$0xff]  }
 0xbe9   :  { %v1794_v42 = vadd.f32 1e-05, %v1793_v41  ;;  %v2991_v41 = vld [vmem:[%s3862_s16 + $0x18] sm:$0xff]  }
 0xbeb   :  { %3002 = vrsqrt.f32 %v1794_v42 }
 0xbf5   :  { %v3003_v47 = vpop.eup %3002 }
 0xbf6   :  { %v1797_v48 = vmul.f32 %v3003_v47, %v1787_v26  ;;  %v1796_v51 = vmul.f32 %v3003_v47, %v1786_v25 }
 0xbf8   :  { %v1810_v52 = vmul.f32 %v1806_v46, %v1797_v48  ;;  %v1809_v53 = vmul.f32 %v1802_v45, %v1796_v51  ;;  %v2563_v46 = vld [vmem:[%s3863_s18] ss:$0 sm:$0xff] }
 0xbf9   :  { %v2564_v48 = vld [vmem:[%s3864_s29] ss:$0 sm:$0xff] }
 0xbfa   :  { %v1823_v54 = vadd.f32 %v1819_v50, %v1810_v52  ;;  %v1822_v55 = vadd.f32 %v1815_v49, %v1809_v53  ;;  %v2992_v51 = vld [vmem:[%s3600_s20] sm:$0xff]   ;;  %v2993_v53 = vld [vmem:[%s3600_s20 + $0x8] sm:$0xff]  }
 0xbfc   :  { %v1858_v58 = vpack.c.bf16 %v1823_v54, %v1823_v54  ;;  %v1857_v59 = vpack.c.bf16 %v1822_v55, %v1822_v55  ;;  %v2565_v54 = vld [vmem:[%s3595_s12] ss:$0 sm:$0xff]  ;;  %s3338_s12 = scalar_lea.vmem %s2331_s4, 128 }
 0xbfd   :  { %p3339_p8 = scmp.ne.s32.totalorder %s2331_s4, %s3338_s12  ;;  %p3344_p10 = scmp.lt.s32.totalorder %s3338_s12, %s3338_s12 }
 0xbfe   :  { %1993 = vmatprep.mubr.bf16.mxu0 %v1858_v58 }
 0xbff   :  { %1994 = vmatmul.mubr.bf16.vlgmr.msra.gmra.mrb[12].mxu0 %v1857_v59  ;;  %p3345_p11 = por %p3344_p10, %p3343_p9 }
 0xc00   :  { %2655 = vmatprep.mubr.msk.bf16.mxu0 %vm3434_vm2, %v3432_v0  ;;  %2640 = vmatpush3.bf16.msra.mxu0 %v2980_v3 }
 0xc01   :  { %2641 = vmatprep.subr.bf16.mxu0 %v3432_v0  ;;  %p3346_p12 = pnand %p3345_p11, %p3339_p8 }
 0xc04   :  { %2642 = vmatpush3.bf16.msra.mxu0 %v2981_v4 }
 0xc05   :  { %2643 = vmatprep.subr.bf16.mxu0 %v3432_v0 }
 0xc08   :  { %2644 = vmatpush3.bf16.msra.mxu0 %v2982_v8 }
 0xc09   :  { %2645 = vmatprep.subr.bf16.mxu0 %v3432_v0 }
 0xc0c   :  { %2646 = vmatpush3.bf16.msra.mxu0 %v2983_v9 }
 0xc0d   :  { %2647 = vmatprep.subr.bf16.mxu0 %v3432_v0 }
 0xc10   :  { %2648 = vmatpush3.bf16.msra.mxu0 %v2984_v10 }
 0xc11   :  { %2649 = vmatprep.subr.bf16.mxu0 %v3432_v0 }
 0xc14   :  { %2650 = vmatpush3.bf16.msra.mxu0 %v2985_v13 }
 0xc15   :  { %2651 = vmatprep.subr.bf16.mxu0 %v3432_v0 }
 0xc18   :  { %2652 = vmatpush3.bf16.msra.mxu0 %v2986_v15 }
 0xc19   :  { %2653 = vmatprep.subr.bf16.mxu0 %v3432_v0 }
 0xc1c   :  { %2654 = vmatpush3.bf16.msra.mxu0 %v2987_v16 }
 0xc1d   :  { %2659 = vmatprep.subr.bf16.mxu0 %v3432_v0 }
 0xcd2   :  { %v2598_v60 = vpop.f32.mrb[12].mxu0 }
 0xcd3   :  { %v2599_v61 = vpop.f32.mrb[13].mxu0 }
 0xcd4   :  { %v2600_v12 = vadd.f32 %v2599_v61, %v2598_v60  ;;  %v2601_v63 = vpop.f32.mrb[14].mxu0 }
 0xcd5   :  { %v2602_v14 = vpop.f32.mrb[15].mxu0  ;;  %v2571_v63 = vld [vmem:[%s3605_s27] ss:$0 sm:$0xff] }
 0xcd6   :  { %v1996_v1 = vadd.f32 %v2600_v12, %v2535_v62 }
 0xcd8   :  { %v2001_v2 = vmax.f32 %v1996_v1, 0.0 }
 0xcda   :  { %2004 = vadd.xlane.f32.xlu0 %v2001_v2 }
 0xd67   :  { %v2005_v5 = vpop.xlane.xlu0 %2004 }
 0xd68   :  { %v2006_v6 = vmul.f32 0.0078125, %v2005_v5 }
 0xd6a   :  { %v2007_v11 = vsub.f32 %v2001_v2, %v2006_v6 }
 0xd6c   :  { %v2008_v7 = vmul.f32 %v2007_v11, %v2007_v11 }
 0xd6e   :  { %2009 = vadd.xlane.f32.xlu1 %v2008_v7 }
 0xdfb   :  { %v2010_v17 = vpop.xlane.xlu1 %2009 }
 0xdfc   :  { %v2011_v18 = vmul.f32 0.0078125, %v2010_v17 }
 0xdfe   :  { %v2012_v19 = vadd.f32 1e-05, %v2011_v18 }
 0xe00   :  { %3004 = vrsqrt.f32 %v2012_v19 }
 0xe0a   :  { %v3005_v21 = vpop.eup %3004 }
 0xe0b   :  { %v2014_v22 = vmul.f32 %v3005_v21, %v2007_v11 }
 0xe0d   :  { %v2021_v24 = vmul.f32 %v2552_v20, %v2014_v22 }
 0xe0f   :  { %v2028_v25 = vadd.f32 %v2553_v23, %v2021_v24 }
 0xe11   :  { %v2046_v26 = vpack.c.bf16 %v2028_v25, %v2028_v25 }
 0xe13   :  { %2656 = vmatmul.mubr.bf16.vlgmr.msra.gmra.mrb[16].mxu0 %v2046_v26 }
 0xe14   :  { %2667 = vmatprep.mubr.msk.bf16.mxu0 %vm3434_vm2, %v3432_v0  ;;  %2660 = vmatpush3.bf16.msra.mxu0 %v2988_v38 }
 0xe15   :  { %2661 = vmatprep.subr.bf16.mxu0 %v3432_v0 }
 0xe18   :  { %2662 = vmatpush3.bf16.msra.mxu0 %v2989_v39 }
 0xe19   :  { %2663 = vmatprep.subr.bf16.mxu0 %v3432_v0 }
 0xe1c   :  { %2664 = vmatpush3.bf16.msra.mxu0 %v2990_v40 }
 0xe1d   :  { %2665 = vmatprep.subr.bf16.mxu0 %v3432_v0 }
 0xe20   :  { %2666 = vmatpush3.bf16.msra.mxu0 %v2991_v41 }
 0xe21   :  { %2671 = vmatprep.subr.bf16.mxu0 %v3432_v0 }
 0xee6   :  { %v2135_v28 = vpop.f32.mrb[16].mxu0 }
 0xee7   :  { %v2136_v29 = vadd.f32 %v2554_v27, %v2135_v28  ;;  %v2657_v30 = vpop.f32.mrb[17].mxu0 }
 0xee8   :  { %v2138_v31 = vpop.f32.mrb[18].mxu0 }
 0xee9   :  { %v2141_v32 = vmax.f32 %v2136_v29, 0.0  ;;  %v2658_v33 = vpop.f32.mrb[19].mxu0 }
 0xeeb   :  { %v2144_v34 = vsel %vm385_vm4, %v2141_v32, 0.0 }
 0xeec   :  { %2145 = vadd.xlane.f32.xlu0 %v2144_v34 }
 0xf79   :  { %v2146_v35 = vpop.xlane.xlu0 %2145 }
 0xf7a   :  { %v2147_v36 = vmul.f32 0.015625, %v2146_v35 }
 0xf7c   :  { %v2148_v57 = vsub.f32 %v2141_v32, %v2147_v36 }
 0xf7e   :  { %v2149_v56 = vmul.f32 %v2148_v57, %v2148_v57 }
 0xf80   :  { %v2150_v37 = vsel %vm385_vm4, %v2149_v56, 0.0 }
 0xf81   :  { %2151 = vadd.xlane.f32.xlu1 %v2150_v37 }
0x100e   :  { %v2152_v42 = vpop.xlane.xlu1 %2151 }
0x100f   :  { %v2153_v43 = vmul.f32 0.015625, %v2152_v42 }
0x1011   :  { %v2154_v44 = vadd.f32 1e-05, %v2153_v43 }
0x1013   :  { %3006 = vrsqrt.f32 %v2154_v44 }
0x101d   :  { %v3007_v45 = vpop.eup %3006 }
0x101e   :  { %v2156_v47 = vmul.f32 %v3007_v45, %v2148_v57 }
0x1020   :  { %v2163_v49 = vmul.f32 %v2563_v46, %v2156_v47 }
0x1022   :  { %v2170_v50 = vadd.f32 %v2564_v48, %v2163_v49 }
0x1024   :  { %v2180_v52 = vpack.c.bf16 %v2170_v50, %v2170_v50 }
0x1026   :  { %2668 = vmatmul.mubr.msk.bf16.vlgmr.msra.gmra.mrb[20].mxu0 %vm385_vm4, %v2180_v52 }
0x1027   :  { %2672 = vmatpush3.bf16.msra.mxu0 %v2992_v51  ;;  %2675 = vmatprep.mubr.msk.bf16.mxu0 %vm3434_vm2, %v3432_v0 }
0x1028   :  { %2673 = vmatprep.subr.bf16.mxu0 %v3432_v0 }
0x102b   :  { %2674 = vmatpush3.bf16.msra.mxu0 %v2993_v53 }
0x10f9   :  { %v2248_v55 = vpop.f32.mrb[20].mxu0 }
0x10fa   :  { %v2249_v58 = vadd.f32 %v2565_v54, %v2248_v55  ;;  %v2669_v59 = vpop.f32.mrb[21].mxu0 }
0x10fb   :  { %v2251_v60 = vpop.f32.mrb[22].mxu0 }
0x10fc   :  { %v2254_v61 = vmax.f32 %v2249_v58, 0.0  ;;  %v2670_v62 = vpop.f32.mrb[23].mxu0 }
0x10fe   :  { %v2260_v12 = vpack.c.bf16 %v2254_v61, %v2254_v61 }
0x1100   :  { %2676 = vmatmul.mubr.msk.bf16.vlgmr.msra.gmra.mrb[24].mxu0 %vm2279_vm5, %v2260_v12 }
0x11d3   :  { %v2317_v14 = vpop.f32.mrb[24].mxu0 }
0x11d4   :  { %v2318_v1 = vadd.f32 %v2571_v63, %v2317_v14  ;;  %v2677_v2 = vpop.f32.mrb[25].mxu0 }
0x11d5   :  { %v2320_v0 = vpop.f32.mrb[26].mxu0 }
0x11d6   :  { %2323 = vst [vmem:[#allocation26] sm:$0xff] %v2318_v1  ;;  %v2678_v3 = vpop.f32.mrb[27].mxu0 }
0x11d7   :  { %3349 = shalt.err (!%p3346_p12)
}
0x11d8   :  { %s3350_s20 = scalar_lea.hbm %s3610_s14, 128 }
0x11d9   :  { %p3351_p13 = scmp.ne.s32.totalorder %s3610_s14, %s3350_s20  ;;  %p3354_p0 = scmp.lt.u32.totalorder %s3350_s20, %s3610_s14 }
0x11db   :  { %p3356_p1 = pnand %p3354_p0, %p3351_p13 }
0x11dd   :  { %3359 = shalt.err (!%p3356_p1)
}
0x11de   :  { %2333 = dma.vmem_to_hbm [thread:$0]  %s2331_s4, 128, %s3610_s14, [#allocation4]  }
0x11df   :  { %3376 = dma.done.wait [#allocation4], 128  }
0x11e0   :  { %3377 = vsyncadd [#allocation4], 4294967168 }
0x11e1   :  { %2337 = vsyncpa [#allocation3], 1 }
0x11e2   :  { %2338 = vsyncpa [#allocation6], 1 }
0x11e3   :  { %2339 = vsyncpa [#allocation9], 1 }
0x11e4   :  { %2340 = vsyncpa [#allocation12], 1 }
0x11e5   :  { %2341 = vsyncpa [#allocation15], 1 }
0x11e6   :  { %2342 = vsyncpa [#allocation18], 1 }
0x11e7   :  { %2343 = vsyncpa [#allocation21], 1 }
0x11e8   :  { %2344 = vsyncpa [#allocation24], 1 }
0x11e9   :  { %2345 = vsyncpa [#allocation4], 1 }

</bundles_post_ra>
